<compile_context>
chip_gen: v7x
topology: tpu7x:2x2x1
jax: 0.10.0
libtpu: 0.0.40
codegen_flags: <defaults>
</compile_context>

<pallas_src>
import functools

import jax
import jax.numpy as jnp
from jax import lax
from jax.experimental import pallas as pl
from jax.experimental.pallas import tpu as pltpu

EPS = 1e-5
TL_MAX = 4096                       # hard cap on the spatial (lane) tile
VMEM_BUDGET = 12 * 1024 * 1024      # double-buffered footprint budget (all gens)


def _round_up(x, m):
    return (x + m - 1) // m * m


def _pick_tile(sp, cap):
    """Largest multiple of 128 that divides `sp` and is <= cap (sp % 128 == 0)."""
    t = max(128, (min(cap, sp) // 128) * 128)
    while t >= 128:
        if sp % t == 0:
            return t
        t -= 128
    return 128


# ---------------------------------------------------------------------------
# Pallas kernels
# ---------------------------------------------------------------------------
def _gemm_stats_kernel(w_ref, x_ref, y_ref, sum_ref, sq_ref):
    """Pass 1: conv GEMM; emit bf16 pre-BN y + per-tile BN partial stats."""
    y = jnp.dot(w_ref[...], x_ref[...].astype(jnp.bfloat16),
                preferred_element_type=jnp.float32)            # (Cout, TL) f32
    y_ref[...] = y.astype(jnp.bfloat16)                        # lane-dense store
    sum_ref[...] = jnp.sum(y, axis=1, keepdims=True)           # (Cout, 1)
    sq_ref[...] = jnp.sum(y * y, axis=1, keepdims=True)        # (Cout, 1)


def _bn_relu_kernel(gamma_ref, beta_ref, psum_ref, psq_ref, y_ref, o_ref,
                    *, inv_count):
    """Pass 2: reduce tiny partials in-kernel, apply BN affine + ReLU to y."""
    mean = jnp.sum(psum_ref[...], axis=(0, 1)) * inv_count     # (Cout, 1)
    ex2 = jnp.sum(psq_ref[...], axis=(0, 1)) * inv_count       # (Cout, 1)
    var = jnp.maximum(ex2 - mean * mean, 0.0)                  # biased (training)
    scale = gamma_ref[...] * lax.rsqrt(var + EPS)              # (Cout, 1)
    shift = beta_ref[...] - mean * scale                       # (Cout, 1)
    y = y_ref[...].astype(jnp.float32)                         # (Cout, TL)
    o_ref[...] = jnp.maximum(y * scale + shift, 0.0)


# ---------------------------------------------------------------------------
# OutConv forward
# ---------------------------------------------------------------------------
def outconv_forward(params, x):
    N, Cin, D, H, W = x.shape
    w5 = params['w']                                   # (Cout, Cin, 1, 1, 1)
    Cout = w5.shape[0]
    wb = w5.reshape(Cout, Cin).astype(jnp.bfloat16)
    gamma = params['gamma'].astype(jnp.float32).reshape(Cout, 1)
    beta = params['beta'].astype(jnp.float32).reshape(Cout, 1)
    # NOTE: params['b'] (conv bias) is intentionally NOT applied — a per-channel
    # constant is exactly cancelled by training-mode BN mean subtraction.

    S = D * H * W
    Sp = _round_up(S, 128)

    # Tile cap: double-buffered per-lane bytes for the heavier of the two passes.
    per_lane = max(2 * (Cin * 4 + Cout * 2),           # pass 1: x f32 in, y bf16 out
                   2 * (Cout * 2 + Cout * 4))          # pass 2: y bf16 in, f32 out
    cap = min(TL_MAX, max(128, (VMEM_BUDGET // per_lane) // 128 * 128))
    if N == 1 and Sp >= 256:
        # v7x has 2 TensorCores: keep >= 2 parallel grid blocks total.
        cap = min(cap, max(128, (Sp // 2) // 128 * 128))
    TL = _pick_tile(Sp, cap)                           # divides Sp -> no tail pad
    n_tiles = Sp // TL

    xf = x.reshape(N, Cin, S)
    if Sp != S:
        # Only when S % 128 != 0: pad < 128 zero voxels.  y == 0 there (no conv
        # bias), so the partial stats stay exact as long as we divide by the
        # true voxel count below.
        xf = jnp.pad(xf, ((0, 0), (0, 0), (0, Sp - S)))

    grid = (N, n_tiles)
    cp = pltpu.CompilerParams(dimension_semantics=("parallel", "parallel"))

    # ---- pass 1: GEMM -> bf16 y + partial BN statistics --------------------
    ybf, psum, psq = pl.pallas_call(
        _gemm_stats_kernel,
        out_shape=(jax.ShapeDtypeStruct((N, Cout, Sp), jnp.bfloat16),
                   jax.ShapeDtypeStruct((N, n_tiles, Cout, 1), jnp.float32),
                   jax.ShapeDtypeStruct((N, n_tiles, Cout, 1), jnp.float32)),
        grid=grid,
        in_specs=[pl.BlockSpec((Cout, Cin), lambda n, t: (0, 0)),
                  pl.BlockSpec((None, Cin, TL), lambda n, t: (n, 0, t))],
        out_specs=(pl.BlockSpec((None, Cout, TL), lambda n, t: (n, 0, t)),
                   pl.BlockSpec((None, None, Cout, 1), lambda n, t: (n, t, 0, 0)),
                   pl.BlockSpec((None, None, Cout, 1), lambda n, t: (n, t, 0, 0))),
        compiler_params=cp,
    )(wb, xf)

    # ---- pass 2: in-kernel stat reduce + BN affine + ReLU over y -----------
    inv_count = 1.0 / float(N * S)                     # true voxel count
    out = pl.pallas_call(
        functools.partial(_bn_relu_kernel, inv_count=inv_count),
        out_shape=jax.ShapeDtypeStruct((N, Cout, Sp), jnp.float32),
        grid=grid,
        in_specs=[pl.BlockSpec((Cout, 1), lambda n, t: (0, 0)),
                  pl.BlockSpec((Cout, 1), lambda n, t: (0, 0)),
                  pl.BlockSpec((N, n_tiles, Cout, 1), lambda n, t: (0, 0, 0, 0)),
                  pl.BlockSpec((N, n_tiles, Cout, 1), lambda n, t: (0, 0, 0, 0)),
                  pl.BlockSpec((None, Cout, TL), lambda n, t: (n, 0, t))],
        out_specs=pl.BlockSpec((None, Cout, TL), lambda n, t: (n, 0, t)),
        compiler_params=cp,
    )(gamma, beta, psum, psq, ybf)

    if Sp != S:
        out = out[:, :, :S]
    return out.reshape(N, Cout, D, H, W)


# ---------------------------------------------------------------------------
# Pure-JAX reference (PyTorch semantics, f32) for a correctness check
# ---------------------------------------------------------------------------
def outconv_reference(params, x):
    w = params['w']
    Cout, Cin = w.shape[0], w.shape[1]
    y = jnp.einsum('ncdhw,oc->nodhw', x, w.reshape(Cout, Cin))
    y = y + params['b'][None, :, None, None, None]
    mean = y.mean(axis=(0, 2, 3, 4), keepdims=True)
    var = ((y - mean) ** 2).mean(axis=(0, 2, 3, 4), keepdims=True)
    yhat = (y - mean) / jnp.sqrt(var + EPS)
    out = (params['gamma'][None, :, None, None, None] * yhat
           + params['beta'][None, :, None, None, None])
    return jnp.maximum(out, 0.0)


# ---------------------------------------------------------------------------
# Parameter init (deterministic, mirrors PyTorch defaults)
# ---------------------------------------------------------------------------
def init_outconv(key, cin, cout):
    k1, k2 = jax.random.split(key)
    bound = 1.0 / jnp.sqrt(cin)
    w = jax.random.uniform(k1, (cout, cin, 1, 1, 1), jnp.float32, -bound, bound)
    b = jax.random.uniform(k2, (cout,), jnp.float32, -bound, bound)
    return {'w': w, 'b': b,
            'gamma': jnp.ones((cout,), jnp.float32),
            'beta': jnp.zeros((cout,), jnp.float32)}


if __name__ == "__main__":
    # OutConv(32, 16) as used in HDD12's decoder head.
    N, Cin, Cout, D, H, W = 2, 32, 16, 16, 16, 16

    key = jax.random.PRNGKey(0)
    kp, kx = jax.random.split(key)
    params = init_outconv(kp, Cin, Cout)
    x = jax.random.normal(kx, (N, Cin, D, H, W), jnp.float32)

    fwd = jax.jit(outconv_forward)
    out = fwd(params, x)
    jax.block_until_ready(out)

    assert out.shape == (N, Cout, D, H, W)
    assert bool(jnp.isfinite(out).all())

    ref = outconv_reference(params, x)
    err = float(jnp.max(jnp.abs(out - ref)))
    assert err < 0.1, f"max abs error vs reference: {err}"

    print("KERNEL_OK")
</pallas_src>

<mosaic_0001>
module attributes {stable_mosaic.version = 11 : i64} {
  func.func @_gemm_stats_kernel(%arg0: i32, %arg1: i32, %arg2: memref<16x32xbf16, #tpu.memory_space<vmem>>, %arg3: memref<1x32x4096xf32, #tpu.memory_space<vmem>>, %arg4: memref<1x16x4096xbf16, #tpu.memory_space<vmem>>, %arg5: memref<1x1x16x1xf32, #tpu.memory_space<vmem>>, %arg6: memref<1x1x16x1xf32, #tpu.memory_space<vmem>>) attributes {dimension_semantics = [#tpu.dimension_semantics<parallel>, #tpu.dimension_semantics<parallel>], iteration_bounds = array<i64: 2, 1>, scalar_prefetch = 0 : i64, scratch_operands = 0 : i64, tpu.core_type = #tpu.core_type<tc>, window_params = [{pipeline_mode = #tpu.pipeline_mode<synchronous>, transform_indices = @transform_0, window_bounds = array<i64: 16, 32>}, {transform_indices = @transform_1, window_bounds = array<i64: 1, 32, 4096>}, {transform_indices = @transform_2, window_bounds = array<i64: 1, 16, 4096>}, {transform_indices = @transform_3, window_bounds = array<i64: 1, 1, 16, 1>}, {transform_indices = @transform_4, window_bounds = array<i64: 1, 1, 16, 1>}]} {
    %c0 = arith.constant 0 : index
    %c0_0 = arith.constant 0 : index
    %0 = vector.load %arg2[%c0, %c0_0] : memref<16x32xbf16, #tpu.memory_space<vmem>>, vector<16x32xbf16>
    %c0_1 = arith.constant 0 : index
    %c0_2 = arith.constant 0 : index
    %c0_3 = arith.constant 0 : index
    %1 = vector.load %arg3[%c0_1, %c0_2, %c0_3] : memref<1x32x4096xf32, #tpu.memory_space<vmem>>, vector<1x32x4096xf32>
    %2 = vector.shape_cast %1 : vector<1x32x4096xf32> to vector<32x4096xf32>
    %3 = arith.truncf %2 : vector<32x4096xf32> to vector<32x4096xbf16>
    %cst = arith.constant dense<0.000000e+00> : vector<16x4096xf32>
    %4 = tpu.matmul %0, %3, %cst {dimension_numbers = #tpu.dot_dimension_numbers<[1], [0], [0], [1], [0, 0, 1, 1], [], []>} : vector<16x32xbf16>, vector<32x4096xbf16>, vector<16x4096xf32> -> vector<16x4096xf32>
    %5 = arith.truncf %4 : vector<16x4096xf32> to vector<16x4096xbf16>
    %c0_4 = arith.constant 0 : index
    %c0_5 = arith.constant 0 : index
    %c0_6 = arith.constant 0 : index
    %6 = vector.load %arg4[%c0_4, %c0_5, %c0_6] : memref<1x16x4096xbf16, #tpu.memory_space<vmem>>, vector<1x16x4096xbf16>
    %7 = vector.shape_cast %6 : vector<1x16x4096xbf16> to vector<16x4096xbf16>
    %8 = vector.shape_cast %5 : vector<16x4096xbf16> to vector<1x16x4096xbf16>
    tpu.vector_store %arg4[%c0_4, %c0_5, %c0_6], %8 {strides = array<i32>} : memref<1x16x4096xbf16, #tpu.memory_space<vmem>>, vector<1x16x4096xbf16>,
    %cst_7 = arith.constant dense<0.000000e+00> : vector<16xf32>
    %9 = vector.multi_reduction <add>, %4, %cst_7 [1] : vector<16x4096xf32> to vector<16xf32>
    %10 = vector.shape_cast %9 : vector<16xf32> to vector<16x1xf32>
    %c0_8 = arith.constant 0 : index
    %c0_9 = arith.constant 0 : index
    %c0_10 = arith.constant 0 : index
    %c0_11 = arith.constant 0 : index
    %11 = vector.load %arg5[%c0_8, %c0_9, %c0_10, %c0_11] : memref<1x1x16x1xf32, #tpu.memory_space<vmem>>, vector<1x1x16x1xf32>
    %12 = vector.shape_cast %11 : vector<1x1x16x1xf32> to vector<16x1xf32>
    %13 = vector.shape_cast %10 : vector<16x1xf32> to vector<1x1x16x1xf32>
    tpu.vector_store %arg5[%c0_8, %c0_9, %c0_10, %c0_11], %13 {strides = array<i32>} : memref<1x1x16x1xf32, #tpu.memory_space<vmem>>, vector<1x1x16x1xf32>,
    %14 = arith.mulf %4, %4 : vector<16x4096xf32>
    %cst_12 = arith.constant dense<0.000000e+00> : vector<16xf32>
    %15 = vector.multi_reduction <add>, %14, %cst_12 [1] : vector<16x4096xf32> to vector<16xf32>
    %16 = vector.shape_cast %15 : vector<16xf32> to vector<16x1xf32>
    %c0_13 = arith.constant 0 : index
    %c0_14 = arith.constant 0 : index
    %c0_15 = arith.constant 0 : index
    %c0_16 = arith.constant 0 : index
    %17 = vector.load %arg6[%c0_13, %c0_14, %c0_15, %c0_16] : memref<1x1x16x1xf32, #tpu.memory_space<vmem>>, vector<1x1x16x1xf32>
    %18 = vector.shape_cast %17 : vector<1x1x16x1xf32> to vector<16x1xf32>
    %19 = vector.shape_cast %16 : vector<16x1xf32> to vector<1x1x16x1xf32>
    tpu.vector_store %arg6[%c0_13, %c0_14, %c0_15, %c0_16], %19 {strides = array<i32>} : memref<1x1x16x1xf32, #tpu.memory_space<vmem>>, vector<1x1x16x1xf32>,
    return
  }
  func.func @transform_0(%arg0: i32, %arg1: i32) -> (i32, i32) {
    %c0_i32 = arith.constant 0 : i32
    %c0_i32_0 = arith.constant 0 : i32
    %c0_i32_1 = arith.constant 0 : i32
    return %c0_i32, %c0_i32_0 : i32, i32
  }
  func.func @transform_1(%arg0: i32, %arg1: i32) -> (i32, i32, i32) {
    %c0_i32 = arith.constant 0 : i32
    %c0_i32_0 = arith.constant 0 : i32
    return %arg0, %c0_i32, %arg1 : i32, i32, i32
  }
  func.func @transform_2(%arg0: i32, %arg1: i32) -> (i32, i32, i32) {
    %c0_i32 = arith.constant 0 : i32
    %c0_i32_0 = arith.constant 0 : i32
    return %arg0, %c0_i32, %arg1 : i32, i32, i32
  }
  func.func @transform_3(%arg0: i32, %arg1: i32) -> (i32, i32, i32, i32) {
    %c0_i32 = arith.constant 0 : i32
    %c0_i32_0 = arith.constant 0 : i32
    %c0_i32_1 = arith.constant 0 : i32
    return %arg0, %arg1, %c0_i32, %c0_i32_0 : i32, i32, i32, i32
  }
  func.func @transform_4(%arg0: i32, %arg1: i32) -> (i32, i32, i32, i32) {
    %c0_i32 = arith.constant 0 : i32
    %c0_i32_0 = arith.constant 0 : i32
    %c0_i32_1 = arith.constant 0 : i32
    return %arg0, %arg1, %c0_i32, %c0_i32_0 : i32, i32, i32, i32
  }
}

module attributes {stable_mosaic.version = 11 : i64} {
  func.func @_bn_relu_kernel(%arg0: i32, %arg1: i32, %arg2: memref<16x1xf32, #tpu.memory_space<vmem>>, %arg3: memref<16x1xf32, #tpu.memory_space<vmem>>, %arg4: memref<2x1x16x1xf32, #tpu.memory_space<vmem>>, %arg5: memref<2x1x16x1xf32, #tpu.memory_space<vmem>>, %arg6: memref<1x16x4096xbf16, #tpu.memory_space<vmem>>, %arg7: memref<1x16x4096xf32, #tpu.memory_space<vmem>>) attributes {dimension_semantics = [#tpu.dimension_semantics<parallel>, #tpu.dimension_semantics<parallel>], iteration_bounds = array<i64: 2, 1>, scalar_prefetch = 0 : i64, scratch_operands = 0 : i64, tpu.core_type = #tpu.core_type<tc>, window_params = [{pipeline_mode = #tpu.pipeline_mode<synchronous>, transform_indices = @transform_0, window_bounds = array<i64: 16, 1>}, {pipeline_mode = #tpu.pipeline_mode<synchronous>, transform_indices = @transform_1, window_bounds = array<i64: 16, 1>}, {pipeline_mode = #tpu.pipeline_mode<synchronous>, transform_indices = @transform_2, window_bounds = array<i64: 2, 1, 16, 1>}, {pipeline_mode = #tpu.pipeline_mode<synchronous>, transform_indices = @transform_3, window_bounds = array<i64: 2, 1, 16, 1>}, {transform_indices = @transform_4, window_bounds = array<i64: 1, 16, 4096>}, {transform_indices = @transform_5, window_bounds = array<i64: 1, 16, 4096>}]} {
    %c0 = arith.constant 0 : index
    %c0_0 = arith.constant 0 : index
    %c0_1 = arith.constant 0 : index
    %c0_2 = arith.constant 0 : index
    %0 = vector.load %arg4[%c0, %c0_0, %c0_1, %c0_2] : memref<2x1x16x1xf32, #tpu.memory_space<vmem>>, vector<2x1x16x1xf32>
    %cst = arith.constant dense<0.000000e+00> : vector<16x1xf32>
    %1 = vector.multi_reduction <add>, %0, %cst [0, 1] : vector<2x1x16x1xf32> to vector<16x1xf32>
    %cst_3 = arith.constant 1.22070313E-4 : f32
    %2 = vector.broadcast %cst_3 : f32 to vector<16x1xf32>
    %3 = arith.mulf %1, %2 : vector<16x1xf32>
    %c0_4 = arith.constant 0 : index
    %c0_5 = arith.constant 0 : index
    %c0_6 = arith.constant 0 : index
    %c0_7 = arith.constant 0 : index
    %4 = vector.load %arg5[%c0_4, %c0_5, %c0_6, %c0_7] : memref<2x1x16x1xf32, #tpu.memory_space<vmem>>, vector<2x1x16x1xf32>
    %cst_8 = arith.constant dense<0.000000e+00> : vector<16x1xf32>
    %5 = vector.multi_reduction <add>, %4, %cst_8 [0, 1] : vector<2x1x16x1xf32> to vector<16x1xf32>
    %cst_9 = arith.constant 1.22070313E-4 : f32
    %6 = vector.broadcast %cst_9 : f32 to vector<16x1xf32>
    %7 = arith.mulf %5, %6 : vector<16x1xf32>
    %8 = arith.mulf %3, %3 : vector<16x1xf32>
    %9 = arith.subf %7, %8 : vector<16x1xf32>
    %cst_10 = arith.constant 0.000000e+00 : f32
    %10 = vector.broadcast %cst_10 : f32 to vector<16x1xf32>
    %11 = arith.maximumf %9, %10 : vector<16x1xf32>
    %c0_11 = arith.constant 0 : index
    %c0_12 = arith.constant 0 : index
    %12 = vector.load %arg2[%c0_11, %c0_12] : memref<16x1xf32, #tpu.memory_space<vmem>>, vector<16x1xf32>
    %cst_13 = arith.constant 9.99999974E-6 : f32
    %13 = vector.broadcast %cst_13 : f32 to vector<16x1xf32>
    %14 = arith.addf %11, %13 : vector<16x1xf32>
    %15 = math.rsqrt %14 : vector<16x1xf32>
    %16 = arith.mulf %12, %15 : vector<16x1xf32>
    %c0_14 = arith.constant 0 : index
    %c0_15 = arith.constant 0 : index
    %17 = vector.load %arg3[%c0_14, %c0_15] : memref<16x1xf32, #tpu.memory_space<vmem>>, vector<16x1xf32>
    %18 = arith.mulf %3, %16 : vector<16x1xf32>
    %19 = arith.subf %17, %18 : vector<16x1xf32>
    %c0_16 = arith.constant 0 : index
    %c0_17 = arith.constant 0 : index
    %c0_18 = arith.constant 0 : index
    %20 = vector.load %arg6[%c0_16, %c0_17, %c0_18] : memref<1x16x4096xbf16, #tpu.memory_space<vmem>>, vector<1x16x4096xbf16>
    %21 = vector.shape_cast %20 : vector<1x16x4096xbf16> to vector<16x4096xbf16>
    %22 = arith.extf %21 : vector<16x4096xbf16> to vector<16x4096xf32>
    %23 = vector.broadcast %16 : vector<16x1xf32> to vector<16x4096xf32>
    %24 = arith.mulf %22, %23 : vector<16x4096xf32>
    %25 = vector.broadcast %19 : vector<16x1xf32> to vector<16x4096xf32>
    %26 = arith.addf %24, %25 : vector<16x4096xf32>
    %cst_19 = arith.constant 0.000000e+00 : f32
    %27 = vector.broadcast %cst_19 : f32 to vector<16x4096xf32>
    %28 = arith.maximumf %26, %27 : vector<16x4096xf32>
    %c0_20 = arith.constant 0 : index
    %c0_21 = arith.constant 0 : index
    %c0_22 = arith.constant 0 : index
    %29 = vector.load %arg7[%c0_20, %c0_21, %c0_22] : memref<1x16x4096xf32, #tpu.memory_space<vmem>>, vector<1x16x4096xf32>
    %30 = vector.shape_cast %29 : vector<1x16x4096xf32> to vector<16x4096xf32>
    %31 = vector.shape_cast %28 : vector<16x4096xf32> to vector<1x16x4096xf32>
    tpu.vector_store %arg7[%c0_20, %c0_21, %c0_22], %31 {strides = array<i32>} : memref<1x16x4096xf32, #tpu.memory_space<vmem>>, vector<1x16x4096xf32>,
    return
  }
  func.func @transform_0(%arg0: i32, %arg1: i32) -> (i32, i32) {
    %c0_i32 = arith.constant 0 : i32
    %c0_i32_0 = arith.constant 0 : i32
    %c0_i32_1 = arith.constant 0 : i32
    return %c0_i32, %c0_i32_0 : i32, i32
  }
  func.func @transform_1(%arg0: i32, %arg1: i32) -> (i32, i32) {
    %c0_i32 = arith.constant 0 : i32
    %c0_i32_0 = arith.constant 0 : i32
    %c0_i32_1 = arith.constant 0 : i32
    return %c0_i32, %c0_i32_0 : i32, i32
  }
  func.func @transform_2(%arg0: i32, %arg1: i32) -> (i32, i32, i32, i32) {
    %c0_i32 = arith.constant 0 : i32
    %c0_i32_0 = arith.constant 0 : i32
    %c0_i32_1 = arith.constant 0 : i32
    %c0_i32_2 = arith.constant 0 : i32
    %c0_i32_3 = arith.constant 0 : i32
    return %c0_i32, %c0_i32_0, %c0_i32_1, %c0_i32_2 : i32, i32, i32, i32
  }
  func.func @transform_3(%arg0: i32, %arg1: i32) -> (i32, i32, i32, i32) {
    %c0_i32 = arith.constant 0 : i32
    %c0_i32_0 = arith.constant 0 : i32
    %c0_i32_1 = arith.constant 0 : i32
    %c0_i32_2 = arith.constant 0 : i32
    %c0_i32_3 = arith.constant 0 : i32
    return %c0_i32, %c0_i32_0, %c0_i32_1, %c0_i32_2 : i32, i32, i32, i32
  }
  func.func @transform_4(%arg0: i32, %arg1: i32) -> (i32, i32, i32) {
    %c0_i32 = arith.constant 0 : i32
    %c0_i32_0 = arith.constant 0 : i32
    return %arg0, %c0_i32, %arg1 : i32, i32, i32
  }
  func.func @transform_5(%arg0: i32, %arg1: i32) -> (i32, i32, i32) {
    %c0_i32 = arith.constant 0 : i32
    %c0_i32_0 = arith.constant 0 : i32
    return %arg0, %c0_i32, %arg1 : i32, i32, i32
  }
}

</mosaic_0001>

<bundles_post_ra>
// kernel: outconv_forward.2
= control target key start
LH: loop header
LB: loop body
LE: loop exit
PB: predicated region body
PF: predicated region fallthrough
CT: control target
= control target key end

     0   :  { %s1968_s15 = smov 0   ;;  %s1970_s16 = smov 0   ;;  %s2229_s0 = inlined_call_operand.vmem [shape: bf16[16,32], index: 0, kind: input, shape index: {}]   ;;  %s2230_s1 = inlined_call_operand.vmem [shape: f32[2,32,4096], index: 1, kind: input, shape index: {}]   ;;  %s2231_s2 = inlined_call_operand.vmem [shape: bf16[2,16,4096], index: 2, kind: output, shape index: {0}]   ;;  %s2232_s3 = inlined_call_operand.vmem [shape: f32[2,1,16,1], index: 3, kind: output, shape index: {1}]   ;;  %s2233_s4 = inlined_call_operand.vmem [shape: f32[2,1,16,1], index: 4, kind: output, shape index: {2}]  }
   0x1   :  { %s1972_s17 = smov 0  }
   0x2 LB: > { %s27_s18 = sadd.s32 1, %s1936_s16  ;;  %p1796_p0 = scmp.ge.s32.totalorder %s1940_s17, 1  ;;  %s1940_s17 = sphi %s1972_s17, %s15_s17   ;;  %s1936_s16 = sphi %s1970_s16, %s2235_s16   ;;  %s1932_s15 = sphi %s1968_s15, %s2234_s15  }
   0x3   : > { %p29_p1 = scmp.ge.s32.totalorder %s27_s18, 2  ;;  %p192_p2 = scmp.lt.s32.totalorder %s1940_s17, 3 }
   0x5   : > { %s2237_s18 = smov (%p29_p1, %s27_s18), 0  ;;  %p193_p3 = pnand %p1796_p0, %p192_p2 }
   0x6   : > { %p245_p4 = scmp.lt.s32.totalorder (!%p193_p3), %s1932_s15, 1  ;;  %v1942_v0 = vmov (!%p193_p3), 0   ;;  %v2015_v24 = vld [vmem:[%s2229_s0] sm:$0xff] (!%p193_p3)   ;;  %vm482_vm0 = vcmask (!%p193_p3), 261120   ;;  %vm1464_vm1 = vcmask (!%p193_p3), 7168  }
   0x7   : > { %196 = sbr.rel (%p193_p3) target bundleno = 454 (0x1c6), region = 28  ;;  %518 = vmatprep.mubr.bf16.mxu0 (!%p193_p3), %v1942_v0  ;;  %561 = vmatprep.mubr.bf16.mxu1 (!%p193_p3), %v1942_v0 }
   0xe   : > { %s2239_s15 = smov (!%p245_p4, %s1932_s15), 1 }
   0xf   : > { %s1856_s19 = sshll.u32 %s2239_s15, 10  ;;  %s1857_s25 = sshll.u32 %s2239_s15, 8 }
  0x10   : > { %s1994_s22 = scalar_lea.vmem %s2230_s1, %s1856_s19  ;;  %s2179_s28 = scalar_lea.vmem %s2231_s2, %s1857_s25 }
  0x11   : > { %v286_v1 = vld [vmem:[%s1994_s22 + $0x8] sm:$0xff]  ;;  %v285_v3 = vld [vmem:[%s1994_s22] sm:$0xff]  ;;  %v288_v6 = vld [vmem:[%s1994_s22 + $0x18] sm:$0xff]  ;;  %s1858_s29 = sshll.u32 %s2239_s15, 4 }
  0x12   : > { %v318_v2 = vld [vmem:[%s1994_s22 + $0x108] sm:$0xff]  ;;  %v317_v5 = vld [vmem:[%s1994_s22 + $0x100] sm:$0xff]  ;;  %v320_v7 = vld [vmem:[%s1994_s22 + $0x118] sm:$0xff]  ;;  %s272_s6 = scalar_lea.vmem %s2232_s3, %s1858_s29  ;;  %s281_s9 = scalar_lea.vmem %s2233_s4, %s1858_s29 }
  0x13   : > { %v414_v4 = vpack.c.bf16 %v318_v2, %v286_v1  ;;  %v413_v8 = vpack.c.bf16 %v317_v5, %v285_v3  ;;  %v416_v9 = vpack.c.bf16 %v320_v7, %v288_v6  ;;  %v287_v10 = vld [vmem:[%s1994_s22 + $0x10] sm:$0xff]  ;;  %v350_v12 = vld [vmem:[%s1994_s22 + $0x208] sm:$0xff]  ;;  %v349_v15 = vld [vmem:[%s1994_s22 + $0x200] sm:$0xff] }
  0x14   : > { %v319_v11 = vld [vmem:[%s1994_s22 + $0x110] sm:$0xff]  ;;  %v382_v14 = vld [vmem:[%s1994_s22 + $0x308] sm:$0xff]  ;;  %v381_v16 = vld [vmem:[%s1994_s22 + $0x300] sm:$0xff] }
  0x15   : > { %486 = vmatprep.subr.bf16.mxu0 %v414_v4  ;;  %v415_v13 = vpack.c.bf16 %v319_v11, %v287_v10  ;;  %529 = vmatprep.subr.bf16.mxu1 %v416_v9  ;;  %v446_v17 = vpack.c.bf16 %v382_v14, %v350_v12  ;;  %v445_v18 = vpack.c.bf16 %v381_v16, %v349_v15  ;;  %v352_v19 = vld [vmem:[%s1994_s22 + $0x218] sm:$0xff]  ;;  %v351_v21 = vld [vmem:[%s1994_s22 + $0x210] sm:$0xff]  ;;  %v290_v25 = vld [vmem:[%s1994_s22 + $0x28] sm:$0xff] }
  0x16   : > { %487 = vmatpush1.bf16.msra.mxu0 %v413_v8  ;;  %v384_v20 = vld [vmem:[%s1994_s22 + $0x318] sm:$0xff]  ;;  %v383_v23 = vld [vmem:[%s1994_s22 + $0x310] sm:$0xff]  ;;  %v322_v26 = vld [vmem:[%s1994_s22 + $0x128] sm:$0xff] }
  0x17   : > { %530 = vmatpush1.bf16.msra.mxu1 %v415_v13  ;;  %v448_v22 = vpack.c.bf16 %v384_v20, %v352_v19  ;;  %488 = vmatprep.subr.bf16.mxu0 %v446_v17  ;;  %v447_v27 = vpack.c.bf16 %v383_v23, %v351_v21  ;;  %v418_v28 = vpack.c.bf16 %v322_v26, %v290_v25  ;;  %v289_v29 = vld [vmem:[%s1994_s22 + $0x20] sm:$0xff]  ;;  %v292_v31 = vld [vmem:[%s1994_s22 + $0x38] sm:$0xff]  ;;  %v291_v33 = vld [vmem:[%s1994_s22 + $0x30] sm:$0xff] }
  0x18   : > { %v321_v30 = vld [vmem:[%s1994_s22 + $0x120] sm:$0xff]  ;;  %v324_v32 = vld [vmem:[%s1994_s22 + $0x138] sm:$0xff]  ;;  %v323_v34 = vld [vmem:[%s1994_s22 + $0x130] sm:$0xff] }
  0x19   : > { %531 = vmatprep.subr.bf16.mxu1 %v448_v22  ;;  %v417_v35 = vpack.c.bf16 %v321_v30, %v289_v29  ;;  %v420_v36 = vpack.c.bf16 %v324_v32, %v292_v31  ;;  %v354_v37 = vld [vmem:[%s1994_s22 + $0x228] sm:$0xff]  ;;  %v353_v39 = vld [vmem:[%s1994_s22 + $0x220] sm:$0xff]  ;;  %v419_v40 = vpack.c.bf16 %v323_v34, %v291_v33  ;;  %v356_v43 = vld [vmem:[%s1994_s22 + $0x238] sm:$0xff] }
  0x1a   : > { %489 = vmatpush1.bf16.msra.mxu0 %v445_v18  ;;  %v386_v38 = vld [vmem:[%s1994_s22 + $0x328] sm:$0xff]  ;;  %v385_v42 = vld [vmem:[%s1994_s22 + $0x320] sm:$0xff]  ;;  %v388_v44 = vld [vmem:[%s1994_s22 + $0x338] sm:$0xff] }
  0x1b   : > { %532 = vmatpush1.bf16.msra.mxu1 %v447_v27  ;;  %572 = vmatprep.subr.bf16.mxu0 %v418_v28  ;;  %v450_v41 = vpack.c.bf16 %v386_v38, %v354_v37  ;;  %v452_v45 = vpack.c.bf16 %v388_v44, %v356_v43  ;;  %v355_v46 = vld [vmem:[%s1994_s22 + $0x230] sm:$0xff]  ;;  %v294_v48 = vld [vmem:[%s1994_s22 + $0x48] sm:$0xff]  ;;  %v449_v50 = vpack.c.bf16 %v385_v42, %v353_v39  ;;  %v296_v51 = vld [vmem:[%s1994_s22 + $0x58] sm:$0xff] }
  0x1c   : > { %615 = vmatprep.subr.bf16.mxu1 %v420_v36  ;;  %v387_v47 = vld [vmem:[%s1994_s22 + $0x330] sm:$0xff]  ;;  %v326_v49 = vld [vmem:[%s1994_s22 + $0x148] sm:$0xff]  ;;  %v328_v52 = vld [vmem:[%s1994_s22 + $0x158] sm:$0xff] }
  0x1d   : > { %1806 = vmatmul.mubr.msk.bf16.vlgmr.msra.gmra.mrb[0].mxu0 %vm482_vm0, %v2015_v24  ;;  %v451_v53 = vpack.c.bf16 %v387_v47, %v355_v46  ;;  %v422_v54 = vpack.c.bf16 %v326_v49, %v294_v48  ;;  %v293_v55 = vld [vmem:[%s1994_s22 + $0x40] sm:$0xff]  ;;  %v295_v57 = vld [vmem:[%s1994_s22 + $0x50] sm:$0xff]  ;;  %v424_v58 = vpack.c.bf16 %v328_v52, %v296_v51  ;;  %v358_v60 = vld [vmem:[%s1994_s22 + $0x248] sm:$0xff] }
  0x1e   : > { %573 = vmatpush1.bf16.msra.mxu0 %v417_v35  ;;  %1807 = vmatmul.mubr.msk.bf16.vlgmr.msra.gmra.mrb[0].mxu1 %vm482_vm0, %v2015_v24  ;;  %v325_v56 = vld [vmem:[%s1994_s22 + $0x140] sm:$0xff]  ;;  %v327_v59 = vld [vmem:[%s1994_s22 + $0x150] sm:$0xff]  ;;  %v390_v61 = vld [vmem:[%s1994_s22 + $0x348] sm:$0xff] }
  0x1f   : > { %616 = vmatpush1.bf16.msra.mxu1 %v419_v40  ;;  %574 = vmatprep.subr.bf16.mxu0 %v450_v41  ;;  %v360_v62 = vld [vmem:[%s1994_s22 + $0x258] sm:$0xff]  ;;  %v421_v1 = vpack.c.bf16 %v325_v56, %v293_v55  ;;  %v423_v2 = vpack.c.bf16 %v327_v59, %v295_v57  ;;  %v454_v3 = vpack.c.bf16 %v390_v61, %v358_v60  ;;  %v357_v4 = vld [vmem:[%s1994_s22 + $0x240] sm:$0xff]  ;;  %v359_v6 = vld [vmem:[%s1994_s22 + $0x250] sm:$0xff] }
  0x20   : > { %617 = vmatprep.subr.bf16.mxu1 %v452_v45  ;;  %604 = vmatprep.mubr.bf16.mxu0 %v1942_v0  ;;  %v392_v63 = vld [vmem:[%s1994_s22 + $0x358] sm:$0xff]  ;;  %v389_v5 = vld [vmem:[%s1994_s22 + $0x340] sm:$0xff]  ;;  %v391_v8 = vld [vmem:[%s1994_s22 + $0x350] sm:$0xff] }
  0x21   : > { %647 = vmatprep.mubr.bf16.mxu1 %v1942_v0  ;;  %v456_v7 = vpack.c.bf16 %v392_v63, %v360_v62  ;;  %v298_v9 = vld [vmem:[%s1994_s22 + $0x68] sm:$0xff]  ;;  %v300_v11 = vld [vmem:[%s1994_s22 + $0x78] sm:$0xff]  ;;  %v453_v13 = vpack.c.bf16 %v389_v5, %v357_v4  ;;  %v455_v14 = vpack.c.bf16 %v391_v8, %v359_v6  ;;  %v297_v16 = vld [vmem:[%s1994_s22 + $0x60] sm:$0xff] }
  0x22   : > { %575 = vmatpush1.bf16.msra.mxu0 %v449_v50  ;;  %v330_v10 = vld [vmem:[%s1994_s22 + $0x168] sm:$0xff]  ;;  %v332_v12 = vld [vmem:[%s1994_s22 + $0x178] sm:$0xff]  ;;  %v329_v17 = vld [vmem:[%s1994_s22 + $0x160] sm:$0xff] }
  0x23   : > { %618 = vmatpush1.bf16.msra.mxu1 %v451_v53  ;;  %658 = vmatprep.subr.bf16.mxu0 %v422_v54  ;;  %v426_v15 = vpack.c.bf16 %v330_v10, %v298_v9  ;;  %v299_v18 = vld [vmem:[%s1994_s22 + $0x70] sm:$0xff]  ;;  %v428_v19 = vpack.c.bf16 %v332_v12, %v300_v11  ;;  %v362_v21 = vld [vmem:[%s1994_s22 + $0x268] sm:$0xff]  ;;  %v364_v23 = vld [vmem:[%s1994_s22 + $0x278] sm:$0xff]  ;;  %v425_v26 = vpack.c.bf16 %v329_v17, %v297_v16 }
  0x24   : > { %701 = vmatprep.subr.bf16.mxu1 %v424_v58  ;;  %v331_v20 = vld [vmem:[%s1994_s22 + $0x170] sm:$0xff]  ;;  %v394_v22 = vld [vmem:[%s1994_s22 + $0x368] sm:$0xff]  ;;  %v396_v25 = vld [vmem:[%s1994_s22 + $0x378] sm:$0xff] }
  0x25   : > { %1808 = vmatmul.mubr.msk.bf16.vlgmr.msra.gmra.mrb[4].mxu0 %vm482_vm0, %v2015_v24  ;;  %v427_v27 = vpack.c.bf16 %v331_v20, %v299_v18  ;;  %v458_v28 = vpack.c.bf16 %v394_v22, %v362_v21  ;;  %v361_v29 = vld [vmem:[%s1994_s22 + $0x260] sm:$0xff]  ;;  %v363_v31 = vld [vmem:[%s1994_s22 + $0x270] sm:$0xff]  ;;  %v460_v32 = vpack.c.bf16 %v396_v25, %v364_v23  ;;  %v302_v34 = vld [vmem:[%s1994_s22 + $0x88] sm:$0xff] }
  0x26   : > { %659 = vmatpush1.bf16.msra.mxu0 %v421_v1  ;;  %1809 = vmatmul.mubr.msk.bf16.vlgmr.msra.gmra.mrb[4].mxu1 %vm482_vm0, %v2015_v24  ;;  %v393_v30 = vld [vmem:[%s1994_s22 + $0x360] sm:$0xff]  ;;  %v395_v33 = vld [vmem:[%s1994_s22 + $0x370] sm:$0xff]  ;;  %v334_v35 = vld [vmem:[%s1994_s22 + $0x188] sm:$0xff] }
  0x27   : > { %702 = vmatpush1.bf16.msra.mxu1 %v423_v2  ;;  %660 = vmatprep.subr.bf16.mxu0 %v454_v3  ;;  %v304_v36 = vld [vmem:[%s1994_s22 + $0x98] sm:$0xff]  ;;  %v457_v38 = vpack.c.bf16 %v393_v30, %v361_v29  ;;  %v459_v39 = vpack.c.bf16 %v395_v33, %v363_v31  ;;  %v430_v40 = vpack.c.bf16 %v334_v35, %v302_v34  ;;  %v301_v41 = vld [vmem:[%s1994_s22 + $0x80] sm:$0xff]  ;;  %v303_v43 = vld [vmem:[%s1994_s22 + $0x90] sm:$0xff] }
  0x28   : > { %703 = vmatprep.subr.bf16.mxu1 %v456_v7  ;;  %690 = vmatprep.mubr.bf16.mxu0 %v1942_v0  ;;  %v336_v37 = vld [vmem:[%s1994_s22 + $0x198] sm:$0xff]  ;;  %v333_v42 = vld [vmem:[%s1994_s22 + $0x180] sm:$0xff]  ;;  %v335_v45 = vld [vmem:[%s1994_s22 + $0x190] sm:$0xff] }
  0x29   : > { %733 = vmatprep.mubr.bf16.mxu1 %v1942_v0  ;;  %v432_v44 = vpack.c.bf16 %v336_v37, %v304_v36  ;;  %v366_v46 = vld [vmem:[%s1994_s22 + $0x288] sm:$0xff]  ;;  %v368_v48 = vld [vmem:[%s1994_s22 + $0x298] sm:$0xff]  ;;  %v429_v50 = vpack.c.bf16 %v333_v42, %v301_v41  ;;  %v431_v51 = vpack.c.bf16 %v335_v45, %v303_v43  ;;  %v365_v53 = vld [vmem:[%s1994_s22 + $0x280] sm:$0xff] }
  0x2a   : > { %661 = vmatpush1.bf16.msra.mxu0 %v453_v13  ;;  %v398_v47 = vld [vmem:[%s1994_s22 + $0x388] sm:$0xff]  ;;  %v400_v49 = vld [vmem:[%s1994_s22 + $0x398] sm:$0xff]  ;;  %v397_v54 = vld [vmem:[%s1994_s22 + $0x380] sm:$0xff] }
  0x2b   : > { %704 = vmatpush1.bf16.msra.mxu1 %v455_v14  ;;  %744 = vmatprep.subr.bf16.mxu0 %v426_v15  ;;  %v462_v52 = vpack.c.bf16 %v398_v47, %v366_v46  ;;  %v367_v55 = vld [vmem:[%s1994_s22 + $0x290] sm:$0xff]  ;;  %v464_v56 = vpack.c.bf16 %v400_v49, %v368_v48  ;;  %v306_v58 = vld [vmem:[%s1994_s22 + $0xa8] sm:$0xff]  ;;  %v308_v60 = vld [vmem:[%s1994_s22 + $0xb8] sm:$0xff]  ;;  %v461_v62 = vpack.c.bf16 %v397_v54, %v365_v53 }
  0x2c   : > { %787 = vmatprep.subr.bf16.mxu1 %v428_v19  ;;  %v399_v57 = vld [vmem:[%s1994_s22 + $0x390] sm:$0xff]  ;;  %v338_v59 = vld [vmem:[%s1994_s22 + $0x1a8] sm:$0xff]  ;;  %v340_v61 = vld [vmem:[%s1994_s22 + $0x1b8] sm:$0xff] }
  0x2d   : > { %1810 = vmatmul.mubr.msk.bf16.vlgmr.msra.gmra.mrb[8].mxu0 %vm482_vm0, %v2015_v24  ;;  %v463_v63 = vpack.c.bf16 %v399_v57, %v367_v55  ;;  %v434_v1 = vpack.c.bf16 %v338_v59, %v306_v58  ;;  %v305_v2 = vld [vmem:[%s1994_s22 + $0xa0] sm:$0xff]  ;;  %v307_v4 = vld [vmem:[%s1994_s22 + $0xb0] sm:$0xff]  ;;  %v436_v5 = vpack.c.bf16 %v340_v61, %v308_v60  ;;  %v370_v7 = vld [vmem:[%s1994_s22 + $0x2a8] sm:$0xff] }
  0x2e   : > { %745 = vmatpush1.bf16.msra.mxu0 %v425_v26  ;;  %1811 = vmatmul.mubr.msk.bf16.vlgmr.msra.gmra.mrb[8].mxu1 %vm482_vm0, %v2015_v24  ;;  %v337_v3 = vld [vmem:[%s1994_s22 + $0x1a0] sm:$0xff]  ;;  %v339_v6 = vld [vmem:[%s1994_s22 + $0x1b0] sm:$0xff]  ;;  %v402_v8 = vld [vmem:[%s1994_s22 + $0x3a8] sm:$0xff] }
  0x2f   : > { %788 = vmatpush1.bf16.msra.mxu1 %v427_v27  ;;  %746 = vmatprep.subr.bf16.mxu0 %v458_v28  ;;  %v372_v9 = vld [vmem:[%s1994_s22 + $0x2b8] sm:$0xff]  ;;  %v433_v11 = vpack.c.bf16 %v337_v3, %v305_v2  ;;  %v435_v12 = vpack.c.bf16 %v339_v6, %v307_v4  ;;  %v466_v13 = vpack.c.bf16 %v402_v8, %v370_v7  ;;  %v369_v14 = vld [vmem:[%s1994_s22 + $0x2a0] sm:$0xff]  ;;  %v371_v16 = vld [vmem:[%s1994_s22 + $0x2b0] sm:$0xff] }
  0x30   : > { %789 = vmatprep.subr.bf16.mxu1 %v460_v32  ;;  %776 = vmatprep.mubr.bf16.mxu0 %v1942_v0  ;;  %v404_v10 = vld [vmem:[%s1994_s22 + $0x3b8] sm:$0xff]  ;;  %v401_v15 = vld [vmem:[%s1994_s22 + $0x3a0] sm:$0xff]  ;;  %v403_v18 = vld [vmem:[%s1994_s22 + $0x3b0] sm:$0xff] }
  0x31   : > { %819 = vmatprep.mubr.bf16.mxu1 %v1942_v0  ;;  %v468_v17 = vpack.c.bf16 %v404_v10, %v372_v9  ;;  %v310_v19 = vld [vmem:[%s1994_s22 + $0xc8] sm:$0xff]  ;;  %v312_v21 = vld [vmem:[%s1994_s22 + $0xd8] sm:$0xff]  ;;  %v465_v23 = vpack.c.bf16 %v401_v15, %v369_v14  ;;  %v467_v25 = vpack.c.bf16 %v403_v18, %v371_v16  ;;  %v309_v27 = vld [vmem:[%s1994_s22 + $0xc0] sm:$0xff] }
  0x32   : > { %747 = vmatpush1.bf16.msra.mxu0 %v457_v38  ;;  %v342_v20 = vld [vmem:[%s1994_s22 + $0x1c8] sm:$0xff]  ;;  %v344_v22 = vld [vmem:[%s1994_s22 + $0x1d8] sm:$0xff]  ;;  %v341_v28 = vld [vmem:[%s1994_s22 + $0x1c0] sm:$0xff] }
  0x33   : > { %790 = vmatpush1.bf16.msra.mxu1 %v459_v39  ;;  %830 = vmatprep.subr.bf16.mxu0 %v430_v40  ;;  %v438_v26 = vpack.c.bf16 %v342_v20, %v310_v19  ;;  %v311_v29 = vld [vmem:[%s1994_s22 + $0xd0] sm:$0xff]  ;;  %v440_v30 = vpack.c.bf16 %v344_v22, %v312_v21  ;;  %v374_v32 = vld [vmem:[%s1994_s22 + $0x2c8] sm:$0xff]  ;;  %v376_v34 = vld [vmem:[%s1994_s22 + $0x2d8] sm:$0xff]  ;;  %v437_v36 = vpack.c.bf16 %v341_v28, %v309_v27 }
  0x34   : > { %873 = vmatprep.subr.bf16.mxu1 %v432_v44  ;;  %v343_v31 = vld [vmem:[%s1994_s22 + $0x1d0] sm:$0xff]  ;;  %v406_v33 = vld [vmem:[%s1994_s22 + $0x3c8] sm:$0xff]  ;;  %v408_v35 = vld [vmem:[%s1994_s22 + $0x3d8] sm:$0xff] }
  0x35   : > { %1812 = vmatmul.mubr.msk.bf16.vlgmr.msra.gmra.mrb[12].mxu0 %vm482_vm0, %v2015_v24  ;;  %v439_v37 = vpack.c.bf16 %v343_v31, %v311_v29  ;;  %v470_v38 = vpack.c.bf16 %v406_v33, %v374_v32  ;;  %v373_v39 = vld [vmem:[%s1994_s22 + $0x2c0] sm:$0xff]  ;;  %v375_v41 = vld [vmem:[%s1994_s22 + $0x2d0] sm:$0xff]  ;;  %v472_v42 = vpack.c.bf16 %v408_v35, %v376_v34  ;;  %v314_v44 = vld [vmem:[%s1994_s22 + $0xe8] sm:$0xff] }
  0x36   : > { %831 = vmatpush1.bf16.msra.mxu0 %v429_v50  ;;  %1813 = vmatmul.mubr.msk.bf16.vlgmr.msra.gmra.mrb[12].mxu1 %vm482_vm0, %v2015_v24  ;;  %v405_v40 = vld [vmem:[%s1994_s22 + $0x3c0] sm:$0xff]  ;;  %v407_v43 = vld [vmem:[%s1994_s22 + $0x3d0] sm:$0xff]  ;;  %v346_v45 = vld [vmem:[%s1994_s22 + $0x1e8] sm:$0xff] }
  0x37   : > { %874 = vmatpush1.bf16.msra.mxu1 %v431_v51  ;;  %832 = vmatprep.subr.bf16.mxu0 %v462_v52  ;;  %v316_v46 = vld [vmem:[%s1994_s22 + $0xf8] sm:$0xff]  ;;  %v469_v48 = vpack.c.bf16 %v405_v40, %v373_v39  ;;  %v471_v49 = vpack.c.bf16 %v407_v43, %v375_v41  ;;  %v442_v50 = vpack.c.bf16 %v346_v45, %v314_v44  ;;  %v313_v51 = vld [vmem:[%s1994_s22 + $0xe0] sm:$0xff]  ;;  %v315_v53 = vld [vmem:[%s1994_s22 + $0xf0] sm:$0xff] }
  0x38   : > { %875 = vmatprep.subr.bf16.mxu1 %v464_v56  ;;  %862 = vmatprep.mubr.bf16.mxu0 %v1942_v0  ;;  %v348_v47 = vld [vmem:[%s1994_s22 + $0x1f8] sm:$0xff]  ;;  %v345_v52 = vld [vmem:[%s1994_s22 + $0x1e0] sm:$0xff]  ;;  %v347_v55 = vld [vmem:[%s1994_s22 + $0x1f0] sm:$0xff] }
  0x39   : > { %905 = vmatprep.mubr.bf16.mxu1 %v1942_v0  ;;  %v444_v54 = vpack.c.bf16 %v348_v47, %v316_v46  ;;  %v378_v56 = vld [vmem:[%s1994_s22 + $0x2e8] sm:$0xff]  ;;  %v380_v58 = vld [vmem:[%s1994_s22 + $0x2f8] sm:$0xff]  ;;  %v441_v60 = vpack.c.bf16 %v345_v52, %v313_v51  ;;  %v443_v61 = vpack.c.bf16 %v347_v55, %v315_v53  ;;  %v379_v3 = vld [vmem:[%s1994_s22 + $0x2f0] sm:$0xff] }
  0x3a   : > { %833 = vmatpush1.bf16.msra.mxu0 %v461_v62  ;;  %v410_v57 = vld [vmem:[%s1994_s22 + $0x3e8] sm:$0xff]  ;;  %v412_v59 = vld [vmem:[%s1994_s22 + $0x3f8] sm:$0xff]  ;;  %v411_v4 = vld [vmem:[%s1994_s22 + $0x3f0] sm:$0xff] }
  0x3b   : > { %876 = vmatpush1.bf16.msra.mxu1 %v463_v63  ;;  %916 = vmatprep.subr.bf16.mxu0 %v434_v1  ;;  %v474_v62 = vpack.c.bf16 %v410_v57, %v378_v56  ;;  %v377_v63 = vld [vmem:[%s1994_s22 + $0x2e0] sm:$0xff]  ;;  %v476_v2 = vpack.c.bf16 %v412_v59, %v380_v58  ;;  %v475_v6 = vpack.c.bf16 %v411_v4, %v379_v3 }
  0x3c   : > { %959 = vmatprep.subr.bf16.mxu1 %v436_v5  ;;  %v409_v1 = vld [vmem:[%s1994_s22 + $0x3e0] sm:$0xff] }
  0x3d   : > { %1814 = vmatmul.mubr.msk.bf16.vlgmr.msra.gmra.mrb[16].mxu0 %vm482_vm0, %v2015_v24  ;;  %v473_v5 = vpack.c.bf16 %v409_v1, %v377_v63 }
  0x3e   : > { %917 = vmatpush1.bf16.msra.mxu0 %v433_v11  ;;  %1815 = vmatmul.mubr.msk.bf16.vlgmr.msra.gmra.mrb[16].mxu1 %vm482_vm0, %v2015_v24 }
  0x3f   : > { %960 = vmatpush1.bf16.msra.mxu1 %v435_v12  ;;  %918 = vmatprep.subr.bf16.mxu0 %v466_v13 }
  0x40   : > { %961 = vmatprep.subr.bf16.mxu1 %v468_v17  ;;  %948 = vmatprep.mubr.bf16.mxu0 %v1942_v0 }
  0x41   : > { %991 = vmatprep.mubr.bf16.mxu1 %v1942_v0 }
  0x42   : > { %919 = vmatpush1.bf16.msra.mxu0 %v465_v23 }
  0x43   : > { %962 = vmatpush1.bf16.msra.mxu1 %v467_v25  ;;  %1002 = vmatprep.subr.bf16.mxu0 %v438_v26 }
  0x44   : > { %1045 = vmatprep.subr.bf16.mxu1 %v440_v30 }
  0x45   : > { %1816 = vmatmul.mubr.msk.bf16.vlgmr.msra.gmra.mrb[20].mxu0 %vm482_vm0, %v2015_v24 }
  0x46   : > { %1003 = vmatpush1.bf16.msra.mxu0 %v437_v36  ;;  %1817 = vmatmul.mubr.msk.bf16.vlgmr.msra.gmra.mrb[20].mxu1 %vm482_vm0, %v2015_v24 }
  0x47   : > { %1046 = vmatpush1.bf16.msra.mxu1 %v439_v37  ;;  %1004 = vmatprep.subr.bf16.mxu0 %v470_v38 }
  0x48   : > { %1047 = vmatprep.subr.bf16.mxu1 %v472_v42  ;;  %1034 = vmatprep.mubr.bf16.mxu0 %v1942_v0 }
  0x49   : > { %1077 = vmatprep.mubr.bf16.mxu1 %v1942_v0 }
  0x4a   : > { %1005 = vmatpush1.bf16.msra.mxu0 %v469_v48 }
  0x4b   : > { %1048 = vmatpush1.bf16.msra.mxu1 %v471_v49  ;;  %1088 = vmatprep.subr.bf16.mxu0 %v442_v50 }
  0x4c   : > { %1131 = vmatprep.subr.bf16.mxu1 %v444_v54 }
  0x4d   : > { %1818 = vmatmul.mubr.msk.bf16.vlgmr.msra.gmra.mrb[24].mxu0 %vm482_vm0, %v2015_v24 }
  0x4e   : > { %1089 = vmatpush1.bf16.msra.mxu0 %v441_v60  ;;  %1819 = vmatmul.mubr.msk.bf16.vlgmr.msra.gmra.mrb[24].mxu1 %vm482_vm0, %v2015_v24 }
  0x4f   : > { %1132 = vmatpush1.bf16.msra.mxu1 %v443_v61  ;;  %1090 = vmatprep.subr.bf16.mxu0 %v474_v62 }
  0x50   : > { %1133 = vmatprep.subr.bf16.mxu1 %v476_v2  ;;  %1120 = vmatprep.mubr.bf16.mxu0 %v1942_v0 }
  0x51   : > { %1163 = vmatprep.mubr.bf16.mxu1 %v1942_v0 }
  0x52   : > { %1091 = vmatpush1.bf16.msra.mxu0 %v473_v5 }
  0x53   : > { %1134 = vmatpush1.bf16.msra.mxu1 %v475_v6 }
  0x55   : > { %1820 = vmatmul.mubr.msk.bf16.vlgmr.msra.gmra.mrb[28].mxu0 %vm482_vm0, %v2015_v24 }
  0x56   : > { %1821 = vmatmul.mubr.msk.bf16.vlgmr.msra.gmra.mrb[28].mxu1 %vm482_vm0, %v2015_v24 }
  0xf0   : > { %v520_v7 = vpop.f32.mrb[0].mxu0 }
  0xf1   : > { %v1467_v8 = vmul.f32 %v520_v7, %v520_v7  ;;  %v522_v9 = vpop.f32.mrb[1].mxu0  ;;  %v563_v10 = vpop.f32.mrb[0].mxu1 }
  0xf2   : > { %v1860_v0 = vpack.c.bf16 %v522_v9, %v520_v7  ;;  %v1398_v11 = vadd.f32 %v522_v9, %v520_v7  ;;  %v1468_v12 = vmul.f32 %v522_v9, %v522_v9  ;;  %v524_v13 = vpop.f32.mrb[2].mxu0  ;;  %v1469_v14 = vmul.f32 %v563_v10, %v563_v10  ;;  %v565_v15 = vpop.f32.mrb[1].mxu1 }
  0xf3   : > { %v1499_v16 = vmul.f32 %v524_v13, %v524_v13  ;;  %v526_v24 = vpop.f32.mrb[3].mxu0  ;;  %v1861_v17 = vpack.c.bf16 %v565_v15, %v563_v10  ;;  %v1470_v18 = vmul.f32 %v565_v15, %v565_v15  ;;  %v567_v19 = vpop.f32.mrb[2].mxu1 }
  0xf4   : > { %1366 = vst [vmem:[%s2179_s28] sm:$0xff] %v1860_v0  ;;  %v1531_v20 = vadd.f32 %v1468_v12, %v1467_v8  ;;  %v1399_v21 = vadd.f32 %v1398_v11, %v563_v10  ;;  %v1876_v22 = vpack.c.bf16 %v526_v24, %v524_v13  ;;  %v1431_v23 = vadd.f32 %v526_v24, %v524_v13  ;;  %v569_v25 = vpop.f32.mrb[3].mxu1 }
  0xf5   : > { %v1500_v26 = vmul.f32 %v526_v24, %v526_v24  ;;  %1367 = vst [vmem:[%s2179_s28 + $0x8] sm:$0xff] %v1861_v17  ;;  %v1501_v27 = vmul.f32 %v567_v19, %v567_v19  ;;  %v1877_v28 = vpack.c.bf16 %v569_v25, %v567_v19  ;;  %v1502_v37 = vmul.f32 %v569_v25, %v569_v25 }
  0xf6   : > { %v1532_v29 = vadd.f32 %v1531_v20, %v1469_v14  ;;  %1382 = vst [vmem:[%s2179_s28 + $0x80] sm:$0xff] %v1876_v22  ;;  %v1400_v30 = vadd.f32 %v1399_v21, %v565_v15  ;;  %v1432_v31 = vadd.f32 %v1431_v23, %v567_v19 }
  0xf7   : > { %v1564_v32 = vadd.f32 %v1500_v26, %v1499_v16  ;;  %1383 = vst [vmem:[%s2179_s28 + $0x88] sm:$0xff] %v1877_v28 }
  0xf8   : > { %v1533_v33 = vadd.f32 %v1532_v29, %v1470_v18  ;;  %v1433_v34 = vadd.f32 %v1432_v31, %v569_v25  ;;  %v606_v35 = vpop.f32.mrb[4].mxu0 }
  0xf9   : > { %v1565_v36 = vadd.f32 %v1564_v32, %v1501_v27  ;;  %v1401_v38 = vadd.f32 %v1400_v30, %v606_v35  ;;  %v1471_v39 = vmul.f32 %v606_v35, %v606_v35  ;;  %v608_v40 = vpop.f32.mrb[5].mxu0  ;;  %v649_v41 = vpop.f32.mrb[4].mxu1 }
  0xfa   : > { %v1862_v42 = vpack.c.bf16 %v608_v40, %v606_v35  ;;  %v1472_v43 = vmul.f32 %v608_v40, %v608_v40  ;;  %v610_v44 = vpop.f32.mrb[6].mxu0  ;;  %v1473_v45 = vmul.f32 %v649_v41, %v649_v41  ;;  %v651_v46 = vpop.f32.mrb[5].mxu1 }
  0xfb   : > { %v1566_v47 = vadd.f32 %v1565_v36, %v1502_v37  ;;  %v1534_v48 = vadd.f32 %v1533_v33, %v1471_v39  ;;  %v1402_v49 = vadd.f32 %v1401_v38, %v608_v40  ;;  %v1434_v50 = vadd.f32 %v1433_v34, %v610_v44  ;;  %v612_v51 = vpop.f32.mrb[7].mxu0  ;;  %v653_v52 = vpop.f32.mrb[6].mxu1 }
  0xfc   : > { %1368 = vst [vmem:[%s2179_s28 + $0x10] sm:$0xff] %v1862_v42  ;;  %v1503_v53 = vmul.f32 %v610_v44, %v610_v44  ;;  %v1878_v54 = vpack.c.bf16 %v612_v51, %v610_v44  ;;  %v1504_v55 = vmul.f32 %v612_v51, %v612_v51  ;;  %v1863_v56 = vpack.c.bf16 %v651_v46, %v649_v41  ;;  %v655_v57 = vpop.f32.mrb[7].mxu1 }
  0xfd   : > { %v1535_v58 = vadd.f32 %v1534_v48, %v1472_v43  ;;  %v1403_v59 = vadd.f32 %v1402_v49, %v649_v41  ;;  %v1435_v60 = vadd.f32 %v1434_v50, %v612_v51  ;;  %v1879_v62 = vpack.c.bf16 %v655_v57, %v653_v52 }
  0xfe   : > { %v1567_v61 = vadd.f32 %v1566_v47, %v1503_v53  ;;  %1384 = vst [vmem:[%s2179_s28 + $0x90] sm:$0xff] %v1878_v54  ;;  %1369 = vst [vmem:[%s2179_s28 + $0x18] sm:$0xff] %v1863_v56  ;;  %v1474_v2 = vmul.f32 %v651_v46, %v651_v46  ;;  %v1505_v5 = vmul.f32 %v653_v52, %v653_v52 }
  0xff   : > { %v1536_v63 = vadd.f32 %v1535_v58, %v1473_v45  ;;  %v1404_v1 = vadd.f32 %v1403_v59, %v651_v46  ;;  %v1436_v3 = vadd.f32 %v1435_v60, %v653_v52  ;;  %1385 = vst [vmem:[%s2179_s28 + $0x98] sm:$0xff] %v1879_v62  ;;  %v1506_v6 = vmul.f32 %v655_v57, %v655_v57 }
 0x100   : > { %v1568_v4 = vadd.f32 %v1567_v61, %v1504_v55  ;;  %v692_v7 = vpop.f32.mrb[8].mxu0 }
 0x101   : > { %v1537_v8 = vadd.f32 %v1536_v63, %v1474_v2  ;;  %v1437_v9 = vadd.f32 %v1436_v3, %v655_v57  ;;  %v1405_v10 = vadd.f32 %v1404_v1, %v692_v7  ;;  %v1475_v0 = vmul.f32 %v692_v7, %v692_v7  ;;  %v694_v11 = vpop.f32.mrb[9].mxu0  ;;  %v735_v12 = vpop.f32.mrb[8].mxu1 }
 0x102   : > { %v1569_v13 = vadd.f32 %v1568_v4, %v1505_v5  ;;  %v1864_v14 = vpack.c.bf16 %v694_v11, %v692_v7  ;;  %v1476_v15 = vmul.f32 %v694_v11, %v694_v11  ;;  %v696_v16 = vpop.f32.mrb[10].mxu0  ;;  %v1477_v24 = vmul.f32 %v735_v12, %v735_v12  ;;  %v737_v17 = vpop.f32.mrb[9].mxu1 }
 0x103   : > { %v1538_v18 = vadd.f32 %v1537_v8, %v1475_v0  ;;  %v1406_v19 = vadd.f32 %v1405_v10, %v694_v11  ;;  %v1438_v20 = vadd.f32 %v1437_v9, %v696_v16  ;;  %v1507_v21 = vmul.f32 %v696_v16, %v696_v16  ;;  %v698_v22 = vpop.f32.mrb[11].mxu0  ;;  %v739_v23 = vpop.f32.mrb[10].mxu1 }
 0x104   : > { %v1570_v25 = vadd.f32 %v1569_v13, %v1506_v6  ;;  %1370 = vst [vmem:[%s2179_s28 + $0x20] sm:$0xff] %v1864_v14  ;;  %v1880_v26 = vpack.c.bf16 %v698_v22, %v696_v16  ;;  %v1508_v27 = vmul.f32 %v698_v22, %v698_v22  ;;  %v1865_v28 = vpack.c.bf16 %v737_v17, %v735_v12  ;;  %v741_v29 = vpop.f32.mrb[11].mxu1 }
 0x105   : > { %v1539_v30 = vadd.f32 %v1538_v18, %v1476_v15  ;;  %v1407_v31 = vadd.f32 %v1406_v19, %v735_v12  ;;  %v1439_v32 = vadd.f32 %v1438_v20, %v698_v22  ;;  %v1881_v34 = vpack.c.bf16 %v741_v29, %v739_v23 }
 0x106   : > { %v1571_v33 = vadd.f32 %v1570_v25, %v1507_v21  ;;  %1386 = vst [vmem:[%s2179_s28 + $0xa0] sm:$0xff] %v1880_v26  ;;  %1371 = vst [vmem:[%s2179_s28 + $0x28] sm:$0xff] %v1865_v28  ;;  %v1478_v37 = vmul.f32 %v737_v17, %v737_v17  ;;  %v1509_v40 = vmul.f32 %v739_v23, %v739_v23 }
 0x107   : > { %v1540_v35 = vadd.f32 %v1539_v30, %v1477_v24  ;;  %v1408_v36 = vadd.f32 %v1407_v31, %v737_v17  ;;  %v1440_v38 = vadd.f32 %v1439_v32, %v739_v23  ;;  %1387 = vst [vmem:[%s2179_s28 + $0xa8] sm:$0xff] %v1881_v34  ;;  %v1510_v41 = vmul.f32 %v741_v29, %v741_v29 }
 0x108   : > { %v1572_v39 = vadd.f32 %v1571_v33, %v1508_v27  ;;  %v778_v42 = vpop.f32.mrb[12].mxu0 }
 0x109   : > { %v1541_v43 = vadd.f32 %v1540_v35, %v1478_v37  ;;  %v1441_v44 = vadd.f32 %v1440_v38, %v741_v29  ;;  %v1409_v45 = vadd.f32 %v1408_v36, %v778_v42  ;;  %v1479_v46 = vmul.f32 %v778_v42, %v778_v42  ;;  %v780_v47 = vpop.f32.mrb[13].mxu0  ;;  %v821_v48 = vpop.f32.mrb[12].mxu1 }
 0x10a   : > { %v1573_v49 = vadd.f32 %v1572_v39, %v1509_v40  ;;  %v1866_v50 = vpack.c.bf16 %v780_v47, %v778_v42  ;;  %v1480_v51 = vmul.f32 %v780_v47, %v780_v47  ;;  %v782_v52 = vpop.f32.mrb[14].mxu0  ;;  %v1481_v53 = vmul.f32 %v821_v48, %v821_v48  ;;  %v823_v54 = vpop.f32.mrb[13].mxu1 }
 0x10b   : > { %v1542_v55 = vadd.f32 %v1541_v43, %v1479_v46  ;;  %v1410_v56 = vadd.f32 %v1409_v45, %v780_v47  ;;  %v1442_v57 = vadd.f32 %v1441_v44, %v782_v52  ;;  %v1511_v58 = vmul.f32 %v782_v52, %v782_v52  ;;  %v784_v59 = vpop.f32.mrb[15].mxu0  ;;  %v825_v60 = vpop.f32.mrb[14].mxu1 }
 0x10c   : > { %v1574_v61 = vadd.f32 %v1573_v49, %v1510_v41  ;;  %1372 = vst [vmem:[%s2179_s28 + $0x30] sm:$0xff] %v1866_v50  ;;  %v1882_v62 = vpack.c.bf16 %v784_v59, %v782_v52  ;;  %v1512_v63 = vmul.f32 %v784_v59, %v784_v59  ;;  %v1867_v1 = vpack.c.bf16 %v823_v54, %v821_v48  ;;  %v827_v2 = vpop.f32.mrb[15].mxu1 }
 0x10d   : > { %v1543_v3 = vadd.f32 %v1542_v55, %v1480_v51  ;;  %v1411_v4 = vadd.f32 %v1410_v56, %v821_v48  ;;  %v1443_v5 = vadd.f32 %v1442_v57, %v784_v59  ;;  %v1883_v7 = vpack.c.bf16 %v827_v2, %v825_v60 }
 0x10e   : > { %v1575_v6 = vadd.f32 %v1574_v61, %v1511_v58  ;;  %1388 = vst [vmem:[%s2179_s28 + $0xb0] sm:$0xff] %v1882_v62  ;;  %1373 = vst [vmem:[%s2179_s28 + $0x38] sm:$0xff] %v1867_v1  ;;  %v1482_v10 = vmul.f32 %v823_v54, %v823_v54  ;;  %v1513_v12 = vmul.f32 %v825_v60, %v825_v60 }
 0x10f   : > { %v1544_v8 = vadd.f32 %v1543_v3, %v1481_v53  ;;  %v1412_v9 = vadd.f32 %v1411_v4, %v823_v54  ;;  %v1444_v0 = vadd.f32 %v1443_v5, %v825_v60  ;;  %1389 = vst [vmem:[%s2179_s28 + $0xb8] sm:$0xff] %v1883_v7  ;;  %v1514_v13 = vmul.f32 %v827_v2, %v827_v2 }
 0x110   : > { %v1576_v11 = vadd.f32 %v1575_v6, %v1512_v63  ;;  %v864_v14 = vpop.f32.mrb[16].mxu0 }
 0x111   : > { %v1545_v15 = vadd.f32 %v1544_v8, %v1482_v10  ;;  %v1445_v16 = vadd.f32 %v1444_v0, %v827_v2  ;;  %v1413_v24 = vadd.f32 %v1412_v9, %v864_v14  ;;  %v1483_v17 = vmul.f32 %v864_v14, %v864_v14  ;;  %v866_v18 = vpop.f32.mrb[17].mxu0  ;;  %v907_v19 = vpop.f32.mrb[16].mxu1 }
 0x112   : > { %v1577_v20 = vadd.f32 %v1576_v11, %v1513_v12  ;;  %v1868_v21 = vpack.c.bf16 %v866_v18, %v864_v14  ;;  %v1484_v22 = vmul.f32 %v866_v18, %v866_v18  ;;  %v868_v23 = vpop.f32.mrb[18].mxu0  ;;  %v1485_v25 = vmul.f32 %v907_v19, %v907_v19  ;;  %v909_v26 = vpop.f32.mrb[17].mxu1 }
 0x113   : > { %v1546_v27 = vadd.f32 %v1545_v15, %v1483_v17  ;;  %v1414_v28 = vadd.f32 %v1413_v24, %v866_v18  ;;  %v1446_v29 = vadd.f32 %v1445_v16, %v868_v23  ;;  %v1515_v30 = vmul.f32 %v868_v23, %v868_v23  ;;  %v870_v31 = vpop.f32.mrb[19].mxu0  ;;  %v911_v32 = vpop.f32.mrb[18].mxu1 }
 0x114   : > { %v1578_v33 = vadd.f32 %v1577_v20, %v1514_v13  ;;  %1374 = vst [vmem:[%s2179_s28 + $0x40] sm:$0xff] %v1868_v21  ;;  %v1884_v34 = vpack.c.bf16 %v870_v31, %v868_v23  ;;  %v1516_v35 = vmul.f32 %v870_v31, %v870_v31  ;;  %v1869_v36 = vpack.c.bf16 %v909_v26, %v907_v19  ;;  %v913_v37 = vpop.f32.mrb[19].mxu1 }
 0x115   : > { %v1547_v38 = vadd.f32 %v1546_v27, %v1484_v22  ;;  %v1415_v39 = vadd.f32 %v1414_v28, %v907_v19  ;;  %v1447_v40 = vadd.f32 %v1446_v29, %v870_v31  ;;  %v1885_v42 = vpack.c.bf16 %v913_v37, %v911_v32 }
 0x116   : > { %v1579_v41 = vadd.f32 %v1578_v33, %v1515_v30  ;;  %1390 = vst [vmem:[%s2179_s28 + $0xc0] sm:$0xff] %v1884_v34  ;;  %1375 = vst [vmem:[%s2179_s28 + $0x48] sm:$0xff] %v1869_v36  ;;  %v1486_v45 = vmul.f32 %v909_v26, %v909_v26  ;;  %v1517_v48 = vmul.f32 %v911_v32, %v911_v32 }
 0x117   : > { %v1548_v43 = vadd.f32 %v1547_v38, %v1485_v25  ;;  %v1416_v44 = vadd.f32 %v1415_v39, %v909_v26  ;;  %v1448_v46 = vadd.f32 %v1447_v40, %v911_v32  ;;  %1391 = vst [vmem:[%s2179_s28 + $0xc8] sm:$0xff] %v1885_v42  ;;  %v1518_v49 = vmul.f32 %v913_v37, %v913_v37 }
 0x118   : > { %v1580_v47 = vadd.f32 %v1579_v41, %v1516_v35  ;;  %v950_v50 = vpop.f32.mrb[20].mxu0 }
 0x119   : > { %v1549_v51 = vadd.f32 %v1548_v43, %v1486_v45  ;;  %v1449_v52 = vadd.f32 %v1448_v46, %v913_v37  ;;  %v1417_v53 = vadd.f32 %v1416_v44, %v950_v50  ;;  %v1487_v54 = vmul.f32 %v950_v50, %v950_v50  ;;  %v952_v55 = vpop.f32.mrb[21].mxu0  ;;  %v993_v56 = vpop.f32.mrb[20].mxu1 }
 0x11a   : > { %v1581_v57 = vadd.f32 %v1580_v47, %v1517_v48  ;;  %v1870_v58 = vpack.c.bf16 %v952_v55, %v950_v50  ;;  %v1488_v59 = vmul.f32 %v952_v55, %v952_v55  ;;  %v954_v60 = vpop.f32.mrb[22].mxu0  ;;  %v1489_v61 = vmul.f32 %v993_v56, %v993_v56  ;;  %v995_v62 = vpop.f32.mrb[21].mxu1 }
 0x11b   : > { %v1550_v63 = vadd.f32 %v1549_v51, %v1487_v54  ;;  %v1418_v1 = vadd.f32 %v1417_v53, %v952_v55  ;;  %v1450_v2 = vadd.f32 %v1449_v52, %v954_v60  ;;  %v1519_v3 = vmul.f32 %v954_v60, %v954_v60  ;;  %v956_v4 = vpop.f32.mrb[23].mxu0  ;;  %v997_v5 = vpop.f32.mrb[22].mxu1 }
 0x11c   : > { %v1582_v6 = vadd.f32 %v1581_v57, %v1518_v49  ;;  %1376 = vst [vmem:[%s2179_s28 + $0x50] sm:$0xff] %v1870_v58  ;;  %v1886_v7 = vpack.c.bf16 %v956_v4, %v954_v60  ;;  %v1520_v8 = vmul.f32 %v956_v4, %v956_v4  ;;  %v1871_v9 = vpack.c.bf16 %v995_v62, %v993_v56  ;;  %v999_v10 = vpop.f32.mrb[23].mxu1 }
 0x11d   : > { %v1551_v0 = vadd.f32 %v1550_v63, %v1488_v59  ;;  %v1419_v11 = vadd.f32 %v1418_v1, %v993_v56  ;;  %v1451_v12 = vadd.f32 %v1450_v2, %v956_v4  ;;  %v1887_v14 = vpack.c.bf16 %v999_v10, %v997_v5 }
 0x11e   : > { %v1583_v13 = vadd.f32 %v1582_v6, %v1519_v3  ;;  %1392 = vst [vmem:[%s2179_s28 + $0xd0] sm:$0xff] %v1886_v7  ;;  %1377 = vst [vmem:[%s2179_s28 + $0x58] sm:$0xff] %v1871_v9  ;;  %v1490_v24 = vmul.f32 %v995_v62, %v995_v62  ;;  %v1521_v19 = vmul.f32 %v997_v5, %v997_v5 }
 0x11f   : > { %v1552_v15 = vadd.f32 %v1551_v0, %v1489_v61  ;;  %v1420_v16 = vadd.f32 %v1419_v11, %v995_v62  ;;  %v1452_v17 = vadd.f32 %v1451_v12, %v997_v5  ;;  %1393 = vst [vmem:[%s2179_s28 + $0xd8] sm:$0xff] %v1887_v14  ;;  %v1522_v20 = vmul.f32 %v999_v10, %v999_v10 }
 0x120   : > { %v1584_v18 = vadd.f32 %v1583_v13, %v1520_v8  ;;  %v1036_v21 = vpop.f32.mrb[24].mxu0 }
 0x121   : > { %v1553_v22 = vadd.f32 %v1552_v15, %v1490_v24  ;;  %v1453_v23 = vadd.f32 %v1452_v17, %v999_v10  ;;  %v1421_v25 = vadd.f32 %v1420_v16, %v1036_v21  ;;  %v1491_v26 = vmul.f32 %v1036_v21, %v1036_v21  ;;  %v1038_v27 = vpop.f32.mrb[25].mxu0  ;;  %v1079_v28 = vpop.f32.mrb[24].mxu1 }
 0x122   : > { %v1585_v29 = vadd.f32 %v1584_v18, %v1521_v19  ;;  %v1872_v30 = vpack.c.bf16 %v1038_v27, %v1036_v21  ;;  %v1492_v31 = vmul.f32 %v1038_v27, %v1038_v27  ;;  %v1040_v32 = vpop.f32.mrb[26].mxu0  ;;  %v1493_v33 = vmul.f32 %v1079_v28, %v1079_v28  ;;  %v1081_v34 = vpop.f32.mrb[25].mxu1 }
 0x123   : > { %v1554_v35 = vadd.f32 %v1553_v22, %v1491_v26  ;;  %v1422_v36 = vadd.f32 %v1421_v25, %v1038_v27  ;;  %v1454_v37 = vadd.f32 %v1453_v23, %v1040_v32  ;;  %v1523_v38 = vmul.f32 %v1040_v32, %v1040_v32  ;;  %v1042_v39 = vpop.f32.mrb[27].mxu0  ;;  %v1083_v40 = vpop.f32.mrb[26].mxu1 }
 0x124   : > { %v1586_v41 = vadd.f32 %v1585_v29, %v1522_v20  ;;  %1378 = vst [vmem:[%s2179_s28 + $0x60] sm:$0xff] %v1872_v30  ;;  %v1888_v42 = vpack.c.bf16 %v1042_v39, %v1040_v32  ;;  %v1524_v43 = vmul.f32 %v1042_v39, %v1042_v39  ;;  %v1873_v44 = vpack.c.bf16 %v1081_v34, %v1079_v28  ;;  %v1085_v45 = vpop.f32.mrb[27].mxu1 }
 0x125   : > { %v1555_v46 = vadd.f32 %v1554_v35, %v1492_v31  ;;  %v1423_v47 = vadd.f32 %v1422_v36, %v1079_v28  ;;  %v1455_v48 = vadd.f32 %v1454_v37, %v1042_v39  ;;  %v1889_v50 = vpack.c.bf16 %v1085_v45, %v1083_v40 }
 0x126   : > { %v1587_v49 = vadd.f32 %v1586_v41, %v1523_v38  ;;  %1394 = vst [vmem:[%s2179_s28 + $0xe0] sm:$0xff] %v1888_v42  ;;  %1379 = vst [vmem:[%s2179_s28 + $0x68] sm:$0xff] %v1873_v44  ;;  %v1494_v53 = vmul.f32 %v1081_v34, %v1081_v34  ;;  %v1525_v56 = vmul.f32 %v1083_v40, %v1083_v40 }
 0x127   : > { %v1556_v51 = vadd.f32 %v1555_v46, %v1493_v33  ;;  %v1424_v52 = vadd.f32 %v1423_v47, %v1081_v34  ;;  %v1456_v54 = vadd.f32 %v1455_v48, %v1083_v40  ;;  %1395 = vst [vmem:[%s2179_s28 + $0xe8] sm:$0xff] %v1889_v50  ;;  %v1526_v57 = vmul.f32 %v1085_v45, %v1085_v45 }
 0x128   : > { %v1588_v55 = vadd.f32 %v1587_v49, %v1524_v43  ;;  %v1122_v58 = vpop.f32.mrb[28].mxu0 }
 0x129   : > { %v1557_v59 = vadd.f32 %v1556_v51, %v1494_v53  ;;  %v1457_v60 = vadd.f32 %v1456_v54, %v1085_v45  ;;  %v1425_v61 = vadd.f32 %v1424_v52, %v1122_v58  ;;  %v1495_v62 = vmul.f32 %v1122_v58, %v1122_v58  ;;  %v1124_v63 = vpop.f32.mrb[29].mxu0  ;;  %v1165_v1 = vpop.f32.mrb[28].mxu1 }
 0x12a   : > { %v1589_v2 = vadd.f32 %v1588_v55, %v1525_v56  ;;  %v1874_v3 = vpack.c.bf16 %v1124_v63, %v1122_v58  ;;  %v1496_v4 = vmul.f32 %v1124_v63, %v1124_v63  ;;  %v1126_v5 = vpop.f32.mrb[30].mxu0  ;;  %v1497_v6 = vmul.f32 %v1165_v1, %v1165_v1  ;;  %v1167_v7 = vpop.f32.mrb[29].mxu1 }
 0x12b   : > { %v1558_v8 = vadd.f32 %v1557_v59, %v1495_v62  ;;  %v1426_v9 = vadd.f32 %v1425_v61, %v1124_v63  ;;  %v1458_v10 = vadd.f32 %v1457_v60, %v1126_v5  ;;  %v1527_v0 = vmul.f32 %v1126_v5, %v1126_v5  ;;  %v1128_v11 = vpop.f32.mrb[31].mxu0  ;;  %v1169_v12 = vpop.f32.mrb[30].mxu1 }
 0x12c   : > { %v1590_v13 = vadd.f32 %v1589_v2, %v1526_v57  ;;  %1380 = vst [vmem:[%s2179_s28 + $0x70] sm:$0xff] %v1874_v3  ;;  %v1890_v14 = vpack.c.bf16 %v1128_v11, %v1126_v5  ;;  %v1528_v15 = vmul.f32 %v1128_v11, %v1128_v11  ;;  %v1875_v16 = vpack.c.bf16 %v1167_v7, %v1165_v1  ;;  %v1171_v24 = vpop.f32.mrb[31].mxu1 }
 0x12d   : > { %v1459_v17 = vadd.f32 %v1458_v10, %v1128_v11  ;;  %v1891_v18 = vpack.c.bf16 %v1171_v24, %v1169_v12  ;;  %v1427_v20 = vadd.f32 %v1426_v9, %v1165_v1  ;;  %v1559_v21 = vadd.f32 %v1558_v8, %v1496_v4 }
 0x12e   : > { %v1591_v19 = vadd.f32 %v1590_v13, %v1527_v0  ;;  %1396 = vst [vmem:[%s2179_s28 + $0xf0] sm:$0xff] %v1890_v14  ;;  %1381 = vst [vmem:[%s2179_s28 + $0x78] sm:$0xff] %v1875_v16  ;;  %v1529_v22 = vmul.f32 %v1169_v12, %v1169_v12  ;;  %v1498_v27 = vmul.f32 %v1167_v7, %v1167_v7 }
 0x12f   : > { %1397 = vst [vmem:[%s2179_s28 + $0xf8] sm:$0xff] %v1891_v18  ;;  %v1460_v23 = vadd.f32 %v1459_v17, %v1169_v12  ;;  %v1428_v26 = vadd.f32 %v1427_v20, %v1167_v7  ;;  %v1560_v28 = vadd.f32 %v1559_v21, %v1497_v6  ;;  %v1530_v30 = vmul.f32 %v1171_v24, %v1171_v24 }
 0x130   : > { %v1592_v25 = vadd.f32 %v1591_v19, %v1528_v15 }
 0x131   : > { %v1461_v29 = vadd.f32 %v1460_v23, %v1171_v24  ;;  %1429 = vadd.xlane.f32.xlu0 %v1428_v26  ;;  %v1561_v31 = vadd.f32 %v1560_v28, %v1498_v27 }
 0x132   : > { %v1593_v32 = vadd.f32 %v1592_v25, %v1529_v22 }
 0x133   : > { %1562 = vadd.xlane.f32.xlu1 %v1561_v31 }
 0x134   : > { %v1594_v33 = vadd.f32 %v1593_v32, %v1530_v30 }
 0x135   : > { %1462 = vadd.xlane.f32.xlu0 %v1461_v29 }
 0x137   : > { %1595 = vadd.xlane.f32.xlu1 %v1594_v33 }
 0x1be   : > { %v1430_v34 = vpop.xlane.xlu0 %1429 }
 0x1bf   : > { %1465 = vst.msk [vmem:[%s272_s6] sm:$0xff] %vm1464_vm1, %v1430_v34 }
 0x1c0   : > { %v1563_v35 = vpop.xlane.xlu1 %1562 }
 0x1c1   : > { %1597 = vst.msk [vmem:[%s281_s9] sm:$0xff] %vm1464_vm1, %v1563_v35 }
 0x1c2   : > { %v1463_v36 = vpop.xlane.xlu0 %1462 }
 0x1c3   : > { %1466 = vst.msk [vmem:[%s272_s6 + $0x8] sm:$0xff] %vm1464_vm1, %v1463_v36 }
 0x1c4   : > { %v1596_v37 = vpop.xlane.xlu1 %1595 }
 0x1c5   : > { %1598 = vst.msk [vmem:[%s281_s9 + $0x8] sm:$0xff] %vm1464_vm1, %v1596_v37 }
 0x1c6 PF: > { %s15_s17 = sadd.s32 1, %s1940_s17   ;;  %s2234_s15 = smov %s1936_s16 }
 0x1c7   : > { %p12_p5 = scmp.ge.s32.totalorder %s15_s17, 4   ;;  %s2235_s16 = smov %s2237_s18 }
 0x1c9   :  { %14 = sbr.rel (!%p12_p5) target bundleno = 2 (0x2), region = 82 }

// kernel: outconv_forward.3
= control target key start
LH: loop header
LB: loop body
LE: loop exit
PB: predicated region body
PF: predicated region fallthrough
CT: control target
= control target key end

     0   :  { %s867_s18 = smov 0   ;;  %s869_s19 = smov 0   ;;  %s1572_s0 = inlined_call_operand.vmem [shape: f32[16,1], index: 0, kind: input, shape index: {}]   ;;  %s1573_s1 = inlined_call_operand.vmem [shape: f32[16,1], index: 1, kind: input, shape index: {}]   ;;  %s1574_s2 = inlined_call_operand.vmem [shape: f32[2,1,16,1], index: 2, kind: input, shape index: {}]   ;;  %s1575_s3 = inlined_call_operand.vmem [shape: f32[2,1,16,1], index: 3, kind: input, shape index: {}]   ;;  %s1576_s4 = inlined_call_operand.vmem [shape: bf16[2,16,4096], index: 4, kind: input, shape index: {}]   ;;  %s1577_s5 = inlined_call_operand.vmem [shape: f32[2,16,4096], index: 5, kind: output, shape index: {}]  }
   0x1   :  { %s871_s20 = smov 0  }
   0x2 LB: > { %s27_s21 = sadd.s32 1, %s830_s19  ;;  %p772_p0 = scmp.ge.s32.totalorder %s834_s20, 1  ;;  %s834_s20 = sphi %s871_s20, %s15_s20   ;;  %s830_s19 = sphi %s869_s19, %s1650_s19   ;;  %s826_s18 = sphi %s867_s18, %s1649_s18  }
   0x3   : > { %p29_p1 = scmp.ge.s32.totalorder %s27_s21, 2  ;;  %p208_p2 = scmp.lt.s32.totalorder %s834_s20, 3 }
   0x5   : > { %s1652_s21 = smov (%p29_p1, %s27_s21), 0  ;;  %p209_p3 = pnand %p772_p0, %p208_p2 }
   0x7   : > { %212 = sbr.rel (%p209_p3) target bundleno = 236 (0xec), region = 40 }
   0xe   : > { %v264_v0 = vld [vmem:[%s1574_s2] sm:$0xff]  ;;  %v266_v1 = vld [vmem:[%s1574_s2 + $0x10] sm:$0xff]  ;;  %vm268_vm0 = vcmask 7168   ;;  %v836_v3 = vmov 0   ;;  %v265_v8 = vld [vmem:[%s1574_s2 + $0x8] sm:$0xff]  ;;  %p245_p4 = scmp.lt.s32.totalorder %s826_s18, 1 }
   0xf   : > { %v277_v2 = vld [vmem:[%s1575_s3] sm:$0xff]  ;;  %806 = vset.pattern.permute.xlu0 %v836_v3  ;;  %v269_v4 = vsel %vm268_vm0, %v264_v0, 0.0  ;;  %v270_v5 = vsel %vm268_vm0, %v266_v1, 0.0  ;;  %v279_v6 = vld [vmem:[%s1575_s3 + $0x10] sm:$0xff]  ;;  %807 = vset.pattern.permute.xlu1 %v836_v3  ;;  %v267_v11 = vld [vmem:[%s1574_s2 + $0x18] sm:$0xff]  ;;  %v272_v12 = vsel %vm268_vm0, %v265_v8, 0.0 }
  0x10   : > { %v281_v7 = vsel %vm268_vm0, %v277_v2, 0.0  ;;  %v271_v9 = vadd.f32 %v270_v5, %v269_v4  ;;  %v282_v10 = vsel %vm268_vm0, %v279_v6, 0.0  ;;  %v278_v13 = vld [vmem:[%s1575_s3 + $0x8] sm:$0xff]  ;;  %v280_v14 = vld [vmem:[%s1575_s3 + $0x18] sm:$0xff]  ;;  %v273_v16 = vsel %vm268_vm0, %v267_v11, 0.0  ;;  %v295_v33 = vld [vmem:[%s1572_s0] sm:$0xff] }
  0x11   : > { %v283_v15 = vadd.f32 %v282_v10, %v281_v7  ;;  %v284_v17 = vsel %vm268_vm0, %v278_v13, 0.0  ;;  %v285_v18 = vsel %vm268_vm0, %v280_v14, 0.0  ;;  %v274_v20 = vadd.f32 %v273_v16, %v272_v12  ;;  %v296_v35 = vld [vmem:[%s1572_s0 + $0x8] sm:$0xff]  ;;  %v303_v38 = vld [vmem:[%s1573_s1] sm:$0xff]  ;;  %s1654_s18 = smov (!%p245_p4, %s826_s18), 1 }
  0x12   : > { %v275_v19 = vmul.f32 0.00012207031, %v271_v9  ;;  %v286_v21 = vadd.f32 %v285_v18, %v284_v17  ;;  %v304_v41 = vld [vmem:[%s1573_s1 + $0x8] sm:$0xff]  ;;  %s779_s25 = sshll.u32 %s1654_s18, 8  ;;  %s780_s29 = sshll.u32 %s1654_s18, 9 }
  0x13   : > { %v287_v22 = vmul.f32 0.00012207031, %v283_v15  ;;  %v276_v24 = vmul.f32 0.00012207031, %v274_v20  ;;  %s939_s28 = scalar_lea.vmem %s1576_s4, %s779_s25  ;;  %s1405_s6 = scalar_lea.vmem %s1577_s5, %s780_s29 }
  0x14   : > { %v289_v23 = vmul.f32 %v275_v19, %v275_v19  ;;  %v288_v25 = vmul.f32 0.00012207031, %v286_v21  ;;  %v942_v45 = vld [vmem:[%s939_s28] sm:$0xff]  ;;  %v945_v46 = vld [vmem:[%s939_s28 + $0x8] sm:$0xff]  ;;  %v948_v47 = vld [vmem:[%s939_s28 + $0x10] sm:$0xff] }
  0x15   : > { %v290_v27 = vmul.f32 %v276_v24, %v276_v24  ;;  %v951_v48 = vld [vmem:[%s939_s28 + $0x18] sm:$0xff]  ;;  %v954_v49 = vld [vmem:[%s939_s28 + $0x20] sm:$0xff]  ;;  %v957_v50 = vld [vmem:[%s939_s28 + $0x28] sm:$0xff]  ;;  %v341_v53 = vunpack.c.l.bf16 %v942_v45  ;;  %v342_v54 = vunpack.c.h.bf16 %v942_v45  ;;  %v343_v55 = vunpack.c.l.bf16 %v945_v46 }
  0x16   : > { %v291_v26 = vsub.f32 %v287_v22, %v289_v23  ;;  %v960_v51 = vld [vmem:[%s939_s28 + $0x30] sm:$0xff]  ;;  %v963_v52 = vld [vmem:[%s939_s28 + $0x38] sm:$0xff]  ;;  %v344_v56 = vunpack.c.h.bf16 %v945_v46  ;;  %v970_v57 = vld [vmem:[%s939_s28 + $0x40] sm:$0xff]  ;;  %v345_v59 = vunpack.c.l.bf16 %v948_v47  ;;  %v346_v60 = vunpack.c.h.bf16 %v948_v47 }
  0x17   : > { %v292_v29 = vsub.f32 %v288_v25, %v290_v27  ;;  %v973_v58 = vld [vmem:[%s939_s28 + $0x48] sm:$0xff]  ;;  %v347_v61 = vunpack.c.l.bf16 %v951_v48  ;;  %v348_v62 = vunpack.c.h.bf16 %v951_v48  ;;  %v980_v63 = vld [vmem:[%s939_s28 + $0x50] sm:$0xff]  ;;  %v983_v0 = vld [vmem:[%s939_s28 + $0x58] sm:$0xff]  ;;  %v349_v1 = vunpack.c.l.bf16 %v954_v49 }
  0x18   : > { %v293_v28 = vmax.f32 %v291_v26, 0.0  ;;  %v350_v2 = vunpack.c.h.bf16 %v954_v49  ;;  %v351_v3 = vunpack.c.l.bf16 %v957_v50  ;;  %v352_v4 = vunpack.c.h.bf16 %v957_v50  ;;  %v990_v5 = vld [vmem:[%s939_s28 + $0x60] sm:$0xff]  ;;  %v993_v6 = vld [vmem:[%s939_s28 + $0x68] sm:$0xff]  ;;  %v1000_v11 = vld [vmem:[%s939_s28 + $0x70] sm:$0xff] }
  0x19   : > { %v294_v31 = vmax.f32 %v292_v29, 0.0  ;;  %v353_v7 = vunpack.c.l.bf16 %v960_v51  ;;  %v354_v8 = vunpack.c.h.bf16 %v960_v51  ;;  %v355_v9 = vunpack.c.l.bf16 %v963_v52  ;;  %v1003_v12 = vld [vmem:[%s939_s28 + $0x78] sm:$0xff]  ;;  %v1014_v21 = vld [vmem:[%s939_s28 + $0x80] sm:$0xff]  ;;  %v1017_v22 = vld [vmem:[%s939_s28 + $0x88] sm:$0xff] }
  0x1a   : > { %v297_v30 = vadd.f32 1e-05, %v293_v28  ;;  %v356_v10 = vunpack.c.h.bf16 %v963_v52  ;;  %v357_v13 = vunpack.c.l.bf16 %v970_v57  ;;  %v358_v14 = vunpack.c.h.bf16 %v970_v57  ;;  %v1024_v27 = vld [vmem:[%s939_s28 + $0x90] sm:$0xff]  ;;  %v1027_v28 = vld [vmem:[%s939_s28 + $0x98] sm:$0xff]  ;;  %v1070_v29 = vld [vmem:[%s939_s28 + $0xe0] sm:$0xff] }
  0x1b   : > { %v298_v32 = vadd.f32 1e-05, %v294_v31  ;;  %v359_v15 = vunpack.c.l.bf16 %v973_v58  ;;  %v360_v16 = vunpack.c.h.bf16 %v973_v58  ;;  %v361_v17 = vunpack.c.l.bf16 %v980_v63  ;;  %v1063_v31 = vld [vmem:[%s939_s28 + $0xd8] sm:$0xff] }
  0x1c   : > { %808 = vrsqrt.f32 %v297_v30  ;;  %v1579_v57 = vunpack.c.l.bf16 %v983_v0  ;;  %v1581_v58 = vunpack.c.l.bf16 %v990_v5  ;;  %v1596_v23 = vunpack.c.h.bf16 %v1027_v28 }
  0x1d   : > { %810 = vrsqrt.f32 %v298_v32  ;;  %v1592_v32 = vunpack.c.h.bf16 %v1017_v22 }
  0x26   : > { %v809_v34 = vpop.eup %808 }
  0x27   : > { %v301_v36 = vmul.f32 %v809_v34, %v295_v33  ;;  %v811_v37 = vpop.eup %810  ;;  %v1034_v33 = vld [vmem:[%s939_s28 + $0xa0] sm:$0xff]  ;;  %v1037_v34 = vld [vmem:[%s939_s28 + $0xa8] sm:$0xff] }
  0x28   : > { %v302_v39 = vmul.f32 %v811_v37, %v296_v35  ;;  %v1040_v35 = vld [vmem:[%s939_s28 + $0xb0] sm:$0xff]  ;;  %v1598_v30 = vunpack.c.h.bf16 %v1034_v33  ;;  %v1601_v20 = vunpack.c.h.bf16 %v1037_v34 }
  0x29   : > { %407 = vperm.xlu0 %806, %v301_v36   ;;  %v305_v40 = vmul.f32 %v301_v36, %v275_v19  ;;  %v1043_v36 = vld [vmem:[%s939_s28 + $0xb8] sm:$0xff]  ;;  %v1604_v26 = vunpack.c.h.bf16 %v1040_v35 }
  0x2a   : > { %v306_v43 = vmul.f32 %v302_v39, %v276_v24  ;;  %v1080_v24 = vld [vmem:[%s939_s28 + $0xf0] sm:$0xff] }
  0x2b   : > { %v307_v42 = vsub.f32 %v303_v38, %v305_v40  ;;  %v1060_v38 = vld [vmem:[%s939_s28 + $0xd0] sm:$0xff]  ;;  %v1083_v40 = vld [vmem:[%s939_s28 + $0xf8] sm:$0xff] }
  0x2c   : > { %v308_v44 = vsub.f32 %v304_v41, %v306_v43  ;;  %v1050_v41 = vld [vmem:[%s939_s28 + $0xc0] sm:$0xff] }
  0x2d   : > { %412 = vperm.xlu0 %806, %v302_v39   ;;  %481 = vperm.xlu1 %807, %v307_v42   ;;  %v1053_v42 = vld [vmem:[%s939_s28 + $0xc8] sm:$0xff] }
  0x31   : > { %486 = vperm.xlu1 %807, %v308_v44   ;;  %v1073_v44 = vld [vmem:[%s939_s28 + $0xe8] sm:$0xff] }
  0xa8   : > { %v408_v18 = vpop.permute.xlu0 %407 }
  0xa9   : > { %v1103_v25 = vmul.f32 %v408_v18, %v341_v53  ;;  %v1107_v19 = vmul.f32 %v408_v18, %v342_v54  ;;  %v1111_v43 = vmul.f32 %v408_v18, %v343_v55  ;;  %v1115_v39 = vmul.f32 %v408_v18, %v344_v56 }
  0xaa   : > { %v1119_v37 = vmul.f32 %v408_v18, %v345_v59  ;;  %v1123_v53 = vmul.f32 %v408_v18, %v346_v60  ;;  %v1127_v45 = vmul.f32 %v408_v18, %v347_v61  ;;  %v1131_v54 = vmul.f32 %v408_v18, %v348_v62 }
  0xab   : > { %v1135_v46 = vmul.f32 %v408_v18, %v349_v1  ;;  %v1139_v55 = vmul.f32 %v408_v18, %v350_v2  ;;  %v1143_v47 = vmul.f32 %v408_v18, %v351_v3  ;;  %v1147_v56 = vmul.f32 %v408_v18, %v352_v4 }
  0xac   : > { %v1151_v48 = vmul.f32 %v408_v18, %v353_v7  ;;  %v1155_v59 = vmul.f32 %v408_v18, %v354_v8  ;;  %v1159_v49 = vmul.f32 %v408_v18, %v355_v9  ;;  %v1163_v60 = vmul.f32 %v408_v18, %v356_v10  ;;  %v413_v8 = vpop.permute.xlu0 %412 }
  0xad   : > { %v1167_v50 = vmul.f32 %v408_v18, %v357_v13  ;;  %v1171_v61 = vmul.f32 %v408_v18, %v358_v14  ;;  %v1175_v51 = vmul.f32 %v408_v18, %v359_v15  ;;  %v1179_v62 = vmul.f32 %v408_v18, %v360_v16 }
  0xae   : > { %v1183_v52 = vmul.f32 %v408_v18, %v361_v17  ;;  %v1578_v1 = vunpack.c.h.bf16 %v980_v63  ;;  %v1191_v3 = vmul.f32 %v408_v18, %v1579_v57  ;;  %v1580_v4 = vunpack.c.h.bf16 %v983_v0 }
  0xaf   : > { %v1199_v9 = vmul.f32 %v408_v18, %v1581_v58  ;;  %v1582_v10 = vunpack.c.h.bf16 %v990_v5  ;;  %v1583_v63 = vunpack.c.l.bf16 %v993_v6  ;;  %v1584_v15 = vunpack.c.h.bf16 %v993_v6 }
  0xb0   : > { %v1187_v2 = vmul.f32 %v408_v18, %v1578_v1  ;;  %v1195_v7 = vmul.f32 %v408_v18, %v1580_v4  ;;  %v1585_v0 = vunpack.c.l.bf16 %v1000_v11  ;;  %v1586_v1 = vunpack.c.h.bf16 %v1000_v11 }
  0xb1   : > { %v1203_v13 = vmul.f32 %v408_v18, %v1582_v10  ;;  %v1207_v14 = vmul.f32 %v408_v18, %v1583_v63  ;;  %v1211_v16 = vmul.f32 %v408_v18, %v1584_v15  ;;  %v1587_v5 = vunpack.c.l.bf16 %v1003_v12 }
  0xb2   : > { %v1215_v17 = vmul.f32 %v408_v18, %v1585_v0  ;;  %v1219_v57 = vmul.f32 %v408_v18, %v1586_v1  ;;  %v1588_v58 = vunpack.c.h.bf16 %v1003_v12  ;;  %v1589_v6 = vunpack.c.l.bf16 %v1014_v21 }
  0xb3   : > { %v1223_v4 = vmul.f32 %v408_v18, %v1587_v5  ;;  %v1590_v15 = vunpack.c.h.bf16 %v1014_v21  ;;  %v1591_v11 = vunpack.c.l.bf16 %v1017_v22  ;;  %v1243_v5 = vmul.f32 %v413_v8, %v1592_v32 }
  0xb4   : > { %v1227_v10 = vmul.f32 %v408_v18, %v1588_v58  ;;  %v1231_v63 = vmul.f32 %v413_v8, %v1589_v6  ;;  %v1593_v12 = vunpack.c.l.bf16 %v1024_v27  ;;  %v1594_v58 = vunpack.c.h.bf16 %v1024_v27 }
  0xb5   : > { %v1235_v0 = vmul.f32 %v413_v8, %v1590_v15  ;;  %v1239_v1 = vmul.f32 %v413_v8, %v1591_v11  ;;  %v1595_v21 = vunpack.c.l.bf16 %v1027_v28  ;;  %v1259_v11 = vmul.f32 %v413_v8, %v1596_v23 }
  0xb6   : > { %v1247_v18 = vmul.f32 %v413_v8, %v1593_v12  ;;  %v1251_v6 = vmul.f32 %v413_v8, %v1594_v58  ;;  %v1597_v22 = vunpack.c.l.bf16 %v1034_v33  ;;  %v1267_v12 = vmul.f32 %v413_v8, %v1598_v30 }
  0xb7   : > { %v1255_v15 = vmul.f32 %v413_v8, %v1595_v21  ;;  %v1600_v27 = vunpack.c.l.bf16 %v1037_v34  ;;  %v1275_v21 = vmul.f32 %v413_v8, %v1601_v20  ;;  %v1603_v28 = vunpack.c.l.bf16 %v1040_v35 }
  0xb8   : > { %v1263_v32 = vmul.f32 %v413_v8, %v1597_v22  ;;  %1599 = vst [vmem:[#allocation2_spill] sm:$0xff] %v1267_v12  ;;  %v1283_v22 = vmul.f32 %v413_v8, %v1604_v26  ;;  %v1606_v33 = vunpack.c.l.bf16 %v1043_v36  ;;  %v1607_v12 = vunpack.c.h.bf16 %v1043_v36 }
  0xb9   : > { %v1271_v58 = vmul.f32 %v413_v8, %v1600_v27  ;;  %1602 = vst [vmem:[#allocation3_spill] sm:$0xff] %v1275_v21  ;;  %v1279_v23 = vmul.f32 %v413_v8, %v1603_v28  ;;  %v1609_v34 = vunpack.c.l.bf16 %v1050_v41  ;;  %v1610_v21 = vunpack.c.h.bf16 %v1050_v41 }
  0xba   : > { %1605 = vst [vmem:[#allocation4_spill] sm:$0xff] %v1283_v22  ;;  %v1287_v30 = vmul.f32 %v413_v8, %v1606_v33  ;;  %v1291_v27 = vmul.f32 %v413_v8, %v1607_v12  ;;  %v1612_v35 = vunpack.c.l.bf16 %v1053_v42  ;;  %v1614_v22 = vunpack.c.h.bf16 %v1053_v42 }
  0xbb   : > { %v1295_v20 = vmul.f32 %v413_v8, %v1609_v34  ;;  %v1299_v28 = vmul.f32 %v413_v8, %v1610_v21  ;;  %v1615_v36 = vunpack.c.l.bf16 %v1060_v38  ;;  %v1618_v41 = vunpack.c.l.bf16 %v1063_v31 }
  0xbc   : > { %1608 = vst [vmem:[#allocation5_spill] sm:$0xff] %v1291_v27  ;;  %v1303_v26 = vmul.f32 %v413_v8, %v1612_v35  ;;  %v1307_v33 = vmul.f32 %v413_v8, %v1614_v22  ;;  %v1617_v27 = vunpack.c.h.bf16 %v1060_v38  ;;  %v1622_v42 = vunpack.c.l.bf16 %v1070_v29 }
  0xbd   : > { %1611 = vst [vmem:[#allocation6_spill] sm:$0xff] %v1299_v28  ;;  %v1311_v12 = vmul.f32 %v413_v8, %v1615_v36  ;;  %v1319_v21 = vmul.f32 %v413_v8, %v1618_v41  ;;  %v1620_v28 = vunpack.c.h.bf16 %v1063_v31  ;;  %v1623_v36 = vunpack.c.h.bf16 %v1070_v29 }
  0xbe   : > { %1613 = vst [vmem:[#allocation7_spill] sm:$0xff] %v1303_v26  ;;  %v1315_v34 = vmul.f32 %v413_v8, %v1617_v27  ;;  %v482_v26 = vpop.permute.xlu1 %481  ;;  %v1327_v22 = vmul.f32 %v413_v8, %v1622_v42  ;;  %v1625_v38 = vunpack.c.l.bf16 %v1073_v44  ;;  %v1626_v41 = vunpack.c.h.bf16 %v1073_v44 }
  0xbf   : > { %1616 = vst [vmem:[#allocation8_spill] sm:$0xff] %v1311_v12  ;;  %1619 = vst [vmem:[#allocation9_spill] sm:$0xff] %v1319_v21  ;;  %v1323_v35 = vmul.f32 %v413_v8, %v1620_v28  ;;  %v1331_v12 = vmul.f32 %v413_v8, %v1623_v36  ;;  %v1627_v31 = vunpack.c.l.bf16 %v1080_v24  ;;  %v1631_v29 = vunpack.c.l.bf16 %v1083_v40 }
  0xc0   : > { %v1335_v27 = vmul.f32 %v413_v8, %v1625_v38  ;;  %v1339_v21 = vmul.f32 %v413_v8, %v1626_v41  ;;  %v489_v44 = vadd.f32 %v482_v26, %v1103_v25  ;;  %v490_v41 = vadd.f32 %v482_v26, %v1107_v19 }
  0xc1   : > { %1621 = vst [vmem:[#allocation10_spill] sm:$0xff] %v1323_v35  ;;  %1624 = vst [vmem:[#allocation11_spill] sm:$0xff] %v1331_v12  ;;  %v1343_v28 = vmul.f32 %v413_v8, %v1627_v31  ;;  %v1629_v35 = vunpack.c.h.bf16 %v1080_v24  ;;  %v1351_v36 = vmul.f32 %v413_v8, %v1631_v29  ;;  %v1633_v12 = vunpack.c.h.bf16 %v1083_v40 }
  0xc2   : > { %v491_v31 = vadd.f32 %v482_v26, %v1111_v43  ;;  %v493_v24 = vadd.f32 %v482_v26, %v1119_v37  ;;  %v495_v29 = vadd.f32 %v482_v26, %v1127_v45  ;;  %v497_v40 = vadd.f32 %v482_v26, %v1135_v46 }
  0xc3   : > { %1628 = vst [vmem:[#allocation12_spill] sm:$0xff] %v1343_v28  ;;  %v1347_v42 = vmul.f32 %v413_v8, %v1629_v35  ;;  %1632 = vst [vmem:[#allocation14_spill] sm:$0xff] %v1351_v36  ;;  %v1355_v38 = vmul.f32 %v413_v8, %v1633_v12  ;;  %v492_v28 = vadd.f32 %v482_v26, %v1115_v39 }
  0xc4   : > { %v494_v35 = vadd.f32 %v482_v26, %v1123_v53  ;;  %v496_v36 = vadd.f32 %v482_v26, %v1131_v54  ;;  %v498_v8 = vadd.f32 %v482_v26, %v1139_v55  ;;  %v499_v25 = vadd.f32 %v482_v26, %v1143_v47 }
  0xc5   : > { %1630 = vst [vmem:[#allocation13_spill] sm:$0xff] %v1347_v42  ;;  %1634 = vst [vmem:[#allocation15_spill] sm:$0xff] %v1355_v38  ;;  %v500_v19 = vadd.f32 %v482_v26, %v1147_v56  ;;  %v501_v43 = vadd.f32 %v482_v26, %v1151_v48  ;;  %v502_v39 = vadd.f32 %v482_v26, %v1155_v59  ;;  %v561_v12 = vmax.f32 %v497_v40, 0.0 }
  0xc6   : > { %v503_v37 = vadd.f32 %v482_v26, %v1159_v49  ;;  %v504_v53 = vadd.f32 %v482_v26, %v1163_v60  ;;  %v505_v45 = vadd.f32 %v482_v26, %v1167_v50  ;;  %v506_v54 = vadd.f32 %v482_v26, %v1171_v61 }
  0xc7   : > { %v507_v46 = vadd.f32 %v482_v26, %v1175_v51  ;;  %v508_v55 = vadd.f32 %v482_v26, %v1179_v62  ;;  %v1379_v47 = vadd.f32 %v482_v26, %v1183_v52  ;;  %v1382_v56 = vadd.f32 %v482_v26, %v1187_v2  ;;  %625 = vst [vmem:[%s1405_s6 + $0x40] sm:$0xff] %v561_v12 }
  0xc8   : > { %v1385_v48 = vadd.f32 %v482_v26, %v1191_v3  ;;  %v1388_v59 = vadd.f32 %v482_v26, %v1195_v7  ;;  %v1391_v49 = vadd.f32 %v482_v26, %v1199_v9  ;;  %v1394_v60 = vadd.f32 %v482_v26, %v1203_v13 }
  0xc9   : > { %v1397_v50 = vadd.f32 %v482_v26, %v1207_v14  ;;  %v1400_v61 = vadd.f32 %v482_v26, %v1211_v16  ;;  %v1408_v51 = vadd.f32 %v482_v26, %v1215_v17  ;;  %v1411_v62 = vadd.f32 %v482_v26, %v1219_v57 }
  0xca   : > { %v1414_v52 = vadd.f32 %v482_v26, %v1223_v4  ;;  %v1417_v2 = vadd.f32 %v482_v26, %v1227_v10  ;;  %v553_v3 = vmax.f32 %v489_v44, 0.0  ;;  %v554_v7 = vmax.f32 %v490_v41, 0.0 }
  0xcb   : > { %v555_v9 = vmax.f32 %v491_v31, 0.0  ;;  %v556_v13 = vmax.f32 %v492_v28, 0.0  ;;  %v557_v14 = vmax.f32 %v493_v24, 0.0  ;;  %v558_v16 = vmax.f32 %v494_v35, 0.0 }
  0xcc   : > { %v559_v17 = vmax.f32 %v495_v29, 0.0  ;;  %v560_v57 = vmax.f32 %v496_v36, 0.0  ;;  %v562_v4 = vmax.f32 %v498_v8, 0.0  ;;  %v563_v38 = vmax.f32 %v499_v25, 0.0  ;;  %617 = vst [vmem:[%s1405_s6] sm:$0xff] %v553_v3  ;;  %618 = vst [vmem:[%s1405_s6 + $0x8] sm:$0xff] %v554_v7  ;;  %v1640_v3 = vld [vmem:[#allocation7_spill] sm:$0xff] }
  0xcd   : > { %v564_v42 = vmax.f32 %v500_v19, 0.0  ;;  %619 = vst [vmem:[%s1405_s6 + $0x10] sm:$0xff] %v555_v9  ;;  %620 = vst [vmem:[%s1405_s6 + $0x18] sm:$0xff] %v556_v13  ;;  %v565_v10 = vmax.f32 %v501_v43, 0.0  ;;  %v566_v26 = vmax.f32 %v502_v39, 0.0  ;;  %v567_v28 = vmax.f32 %v503_v37, 0.0 }
  0xce   : > { %v568_v44 = vmax.f32 %v504_v53, 0.0  ;;  %621 = vst [vmem:[%s1405_s6 + $0x20] sm:$0xff] %v557_v14  ;;  %622 = vst [vmem:[%s1405_s6 + $0x28] sm:$0xff] %v558_v16  ;;  %v569_v36 = vmax.f32 %v505_v45, 0.0  ;;  %v570_v41 = vmax.f32 %v506_v54, 0.0  ;;  %v571_v31 = vmax.f32 %v507_v46, 0.0 }
  0xcf   : > { %623 = vst [vmem:[%s1405_s6 + $0x30] sm:$0xff] %v559_v17  ;;  %624 = vst [vmem:[%s1405_s6 + $0x38] sm:$0xff] %v560_v57  ;;  %v572_v24 = vmax.f32 %v508_v55, 0.0  ;;  %v573_v35 = vmax.f32 %v1379_v47, 0.0  ;;  %v574_v29 = vmax.f32 %v1382_v56, 0.0  ;;  %v575_v40 = vmax.f32 %v1385_v48, 0.0 }
  0xd0   : > { %626 = vst [vmem:[%s1405_s6 + $0x48] sm:$0xff] %v562_v4  ;;  %627 = vst [vmem:[%s1405_s6 + $0x50] sm:$0xff] %v563_v38  ;;  %v576_v8 = vmax.f32 %v1388_v59, 0.0  ;;  %v487_v38 = vpop.permute.xlu1 %486  ;;  %v578_v25 = vmax.f32 %v1394_v60, 0.0  ;;  %v579_v19 = vmax.f32 %v1397_v50, 0.0  ;;  %v580_v43 = vmax.f32 %v1400_v61, 0.0 }
  0xd1   : > { %628 = vst [vmem:[%s1405_s6 + $0x58] sm:$0xff] %v564_v42  ;;  %629 = vst [vmem:[%s1405_s6 + $0x60] sm:$0xff] %v565_v10  ;;  %v577_v42 = vmax.f32 %v1391_v49, 0.0  ;;  %v581_v39 = vmax.f32 %v1408_v51, 0.0  ;;  %v582_v37 = vmax.f32 %v1411_v62, 0.0  ;;  %v583_v53 = vmax.f32 %v1414_v52, 0.0 }
  0xd2   : > { %630 = vst [vmem:[%s1405_s6 + $0x68] sm:$0xff] %v566_v26  ;;  %631 = vst [vmem:[%s1405_s6 + $0x70] sm:$0xff] %v567_v28  ;;  %v584_v45 = vmax.f32 %v1417_v2, 0.0  ;;  %v521_v54 = vadd.f32 %v487_v38, %v1231_v63  ;;  %v522_v46 = vadd.f32 %v487_v38, %v1235_v0  ;;  %v523_v55 = vadd.f32 %v487_v38, %v1239_v1  ;;  %v1635_v60 = vld [vmem:[#allocation2_spill] sm:$0xff]  ;;  %v1636_v50 = vld [vmem:[#allocation3_spill] sm:$0xff] }
  0xd3   : > { %632 = vst [vmem:[%s1405_s6 + $0x78] sm:$0xff] %v568_v44  ;;  %633 = vst [vmem:[%s1405_s6 + $0x80] sm:$0xff] %v569_v36  ;;  %v524_v47 = vadd.f32 %v487_v38, %v1243_v5  ;;  %v525_v56 = vadd.f32 %v487_v38, %v1247_v18  ;;  %v526_v48 = vadd.f32 %v487_v38, %v1251_v6  ;;  %v1637_v51 = vld [vmem:[#allocation4_spill] sm:$0xff]  ;;  %v1638_v52 = vld [vmem:[#allocation5_spill] sm:$0xff] }
  0xd4   : > { %634 = vst [vmem:[%s1405_s6 + $0x88] sm:$0xff] %v570_v41  ;;  %635 = vst [vmem:[%s1405_s6 + $0x90] sm:$0xff] %v571_v31  ;;  %v527_v59 = vadd.f32 %v487_v38, %v1255_v15  ;;  %v528_v49 = vadd.f32 %v487_v38, %v1259_v11  ;;  %v529_v63 = vadd.f32 %v487_v38, %v1263_v32  ;;  %v1639_v2 = vld [vmem:[#allocation6_spill] sm:$0xff]  ;;  %v1641_v9 = vld [vmem:[#allocation8_spill] sm:$0xff]  ;;  %v586_v41 = vmax.f32 %v522_v46, 0.0 }
  0xd5   : > { %636 = vst [vmem:[%s1405_s6 + $0x98] sm:$0xff] %v572_v24  ;;  %637 = vst [vmem:[%s1405_s6 + $0xa0] sm:$0xff] %v573_v35  ;;  %v530_v0 = vadd.f32 %v487_v38, %v1635_v60  ;;  %v531_v1 = vadd.f32 %v487_v38, %v1271_v58  ;;  %v532_v5 = vadd.f32 %v487_v38, %v1636_v50  ;;  %v1644_v17 = vld [vmem:[#allocation11_spill] sm:$0xff]  ;;  %v1646_v10 = vld [vmem:[#allocation13_spill] sm:$0xff]  ;;  %v588_v31 = vmax.f32 %v524_v47, 0.0 }
  0xd6   : > { %638 = vst [vmem:[%s1405_s6 + $0xa8] sm:$0xff] %v574_v29  ;;  %639 = vst [vmem:[%s1405_s6 + $0xb0] sm:$0xff] %v575_v40  ;;  %v533_v61 = vadd.f32 %v487_v38, %v1279_v23  ;;  %v534_v62 = vadd.f32 %v487_v38, %v1637_v51  ;;  %v535_v18 = vadd.f32 %v487_v38, %v1287_v30  ;;  %v1642_v23 = vld [vmem:[#allocation9_spill] sm:$0xff]  ;;  %v1643_v30 = vld [vmem:[#allocation10_spill] sm:$0xff]  ;;  %v589_v24 = vmax.f32 %v525_v56, 0.0 }
  0xd7   : > { %640 = vst [vmem:[%s1405_s6 + $0xb8] sm:$0xff] %v576_v8  ;;  %641 = vst [vmem:[%s1405_s6 + $0xc0] sm:$0xff] %v577_v42  ;;  %v536_v6 = vadd.f32 %v487_v38, %v1638_v52  ;;  %v537_v15 = vadd.f32 %v487_v38, %v1295_v20  ;;  %v538_v11 = vadd.f32 %v487_v38, %v1639_v2  ;;  %v1647_v28 = vld [vmem:[#allocation14_spill] sm:$0xff]  ;;  %v1648_v44 = vld [vmem:[#allocation15_spill] sm:$0xff]  ;;  %v590_v35 = vmax.f32 %v526_v48, 0.0 }
  0xd8   : > { %642 = vst [vmem:[%s1405_s6 + $0xc8] sm:$0xff] %v578_v25  ;;  %643 = vst [vmem:[%s1405_s6 + $0xd0] sm:$0xff] %v579_v19  ;;  %v539_v32 = vadd.f32 %v487_v38, %v1640_v3  ;;  %v540_v7 = vadd.f32 %v487_v38, %v1307_v33  ;;  %v1484_v58 = vadd.f32 %v487_v38, %v1641_v9  ;;  %v591_v29 = vmax.f32 %v527_v59, 0.0 }
  0xd9   : > { %644 = vst [vmem:[%s1405_s6 + $0xd8] sm:$0xff] %v580_v43  ;;  %645 = vst [vmem:[%s1405_s6 + $0xe0] sm:$0xff] %v581_v39  ;;  %v1487_v13 = vadd.f32 %v487_v38, %v1315_v34  ;;  %v1490_v14 = vadd.f32 %v487_v38, %v1642_v23  ;;  %v1493_v16 = vadd.f32 %v487_v38, %v1643_v30  ;;  %v1645_v34 = vld [vmem:[#allocation12_spill] sm:$0xff]  ;;  %v592_v40 = vmax.f32 %v528_v49, 0.0 }
  0xda   : > { %646 = vst [vmem:[%s1405_s6 + $0xe8] sm:$0xff] %v582_v37  ;;  %647 = vst [vmem:[%s1405_s6 + $0xf0] sm:$0xff] %v583_v53  ;;  %v1496_v20 = vadd.f32 %v487_v38, %v1327_v22  ;;  %v1499_v57 = vadd.f32 %v487_v38, %v1644_v17  ;;  %v1502_v33 = vadd.f32 %v487_v38, %v1335_v27  ;;  %v585_v27 = vmax.f32 %v521_v54, 0.0 }
  0xdb   : > { %648 = vst [vmem:[%s1405_s6 + $0xf8] sm:$0xff] %v584_v45  ;;  %v1505_v12 = vadd.f32 %v487_v38, %v1339_v21  ;;  %v1508_v4 = vadd.f32 %v487_v38, %v1645_v34  ;;  %v1511_v26 = vadd.f32 %v487_v38, %v1646_v10  ;;  %v1514_v22 = vadd.f32 %v487_v38, %v1647_v28 }
  0xdc   : > { %v1517_v36 = vadd.f32 %v487_v38, %v1648_v44  ;;  %v587_v21 = vmax.f32 %v523_v55, 0.0  ;;  %v593_v8 = vmax.f32 %v529_v63, 0.0  ;;  %v594_v42 = vmax.f32 %v530_v0, 0.0  ;;  %649 = vst [vmem:[%s1405_s6 + $0x100] sm:$0xff] %v585_v27  ;;  %650 = vst [vmem:[%s1405_s6 + $0x108] sm:$0xff] %v586_v41 }
  0xdd   : > { %v595_v25 = vmax.f32 %v531_v1, 0.0  ;;  %v596_v19 = vmax.f32 %v532_v5, 0.0  ;;  %652 = vst [vmem:[%s1405_s6 + $0x118] sm:$0xff] %v588_v31  ;;  %v597_v38 = vmax.f32 %v533_v61, 0.0  ;;  %v598_v43 = vmax.f32 %v534_v62, 0.0  ;;  %653 = vst [vmem:[%s1405_s6 + $0x120] sm:$0xff] %v589_v24 }
  0xde   : > { %651 = vst [vmem:[%s1405_s6 + $0x110] sm:$0xff] %v587_v21  ;;  %v599_v39 = vmax.f32 %v535_v18, 0.0  ;;  %v600_v37 = vmax.f32 %v536_v6, 0.0  ;;  %654 = vst [vmem:[%s1405_s6 + $0x128] sm:$0xff] %v590_v35  ;;  %v601_v53 = vmax.f32 %v537_v15, 0.0  ;;  %v602_v45 = vmax.f32 %v538_v11, 0.0 }
  0xdf   : > { %655 = vst [vmem:[%s1405_s6 + $0x130] sm:$0xff] %v591_v29  ;;  %656 = vst [vmem:[%s1405_s6 + $0x138] sm:$0xff] %v592_v40  ;;  %v603_v54 = vmax.f32 %v539_v32, 0.0  ;;  %v604_v46 = vmax.f32 %v540_v7, 0.0  ;;  %v605_v55 = vmax.f32 %v1484_v58, 0.0  ;;  %v606_v47 = vmax.f32 %v1487_v13, 0.0 }
  0xe0   : > { %657 = vst [vmem:[%s1405_s6 + $0x140] sm:$0xff] %v593_v8  ;;  %658 = vst [vmem:[%s1405_s6 + $0x148] sm:$0xff] %v594_v42  ;;  %v607_v56 = vmax.f32 %v1490_v14, 0.0  ;;  %v608_v48 = vmax.f32 %v1493_v16, 0.0  ;;  %v609_v59 = vmax.f32 %v1496_v20, 0.0  ;;  %v610_v49 = vmax.f32 %v1499_v57, 0.0 }
  0xe1   : > { %659 = vst [vmem:[%s1405_s6 + $0x150] sm:$0xff] %v595_v25  ;;  %660 = vst [vmem:[%s1405_s6 + $0x158] sm:$0xff] %v596_v19  ;;  %v611_v63 = vmax.f32 %v1502_v33, 0.0  ;;  %v612_v60 = vmax.f32 %v1505_v12, 0.0  ;;  %v613_v0 = vmax.f32 %v1508_v4, 0.0  ;;  %v614_v1 = vmax.f32 %v1511_v26, 0.0 }
  0xe2   : > { %661 = vst [vmem:[%s1405_s6 + $0x160] sm:$0xff] %v597_v38  ;;  %662 = vst [vmem:[%s1405_s6 + $0x168] sm:$0xff] %v598_v43  ;;  %v615_v50 = vmax.f32 %v1514_v22, 0.0  ;;  %v616_v5 = vmax.f32 %v1517_v36, 0.0 }
  0xe3   : > { %663 = vst [vmem:[%s1405_s6 + $0x170] sm:$0xff] %v599_v39  ;;  %664 = vst [vmem:[%s1405_s6 + $0x178] sm:$0xff] %v600_v37 }
  0xe4   : > { %665 = vst [vmem:[%s1405_s6 + $0x180] sm:$0xff] %v601_v53  ;;  %666 = vst [vmem:[%s1405_s6 + $0x188] sm:$0xff] %v602_v45 }
  0xe5   : > { %667 = vst [vmem:[%s1405_s6 + $0x190] sm:$0xff] %v603_v54  ;;  %668 = vst [vmem:[%s1405_s6 + $0x198] sm:$0xff] %v604_v46 }
  0xe6   : > { %669 = vst [vmem:[%s1405_s6 + $0x1a0] sm:$0xff] %v605_v55  ;;  %670 = vst [vmem:[%s1405_s6 + $0x1a8] sm:$0xff] %v606_v47 }
  0xe7   : > { %671 = vst [vmem:[%s1405_s6 + $0x1b0] sm:$0xff] %v607_v56  ;;  %672 = vst [vmem:[%s1405_s6 + $0x1b8] sm:$0xff] %v608_v48 }
  0xe8   : > { %673 = vst [vmem:[%s1405_s6 + $0x1c0] sm:$0xff] %v609_v59  ;;  %674 = vst [vmem:[%s1405_s6 + $0x1c8] sm:$0xff] %v610_v49 }
  0xe9   : > { %675 = vst [vmem:[%s1405_s6 + $0x1d0] sm:$0xff] %v611_v63  ;;  %676 = vst [vmem:[%s1405_s6 + $0x1d8] sm:$0xff] %v612_v60 }
  0xea   : > { %677 = vst [vmem:[%s1405_s6 + $0x1e0] sm:$0xff] %v613_v0  ;;  %678 = vst [vmem:[%s1405_s6 + $0x1e8] sm:$0xff] %v614_v1 }
  0xeb   : > { %679 = vst [vmem:[%s1405_s6 + $0x1f0] sm:$0xff] %v615_v50  ;;  %680 = vst [vmem:[%s1405_s6 + $0x1f8] sm:$0xff] %v616_v5 }
  0xec PF: > { %s15_s20 = sadd.s32 1, %s834_s20   ;;  %s1649_s18 = smov %s830_s19 }
  0xed   : > { %p12_p5 = scmp.ge.s32.totalorder %s15_s20, 4   ;;  %s1650_s19 = smov %s1652_s21 }
  0xef   :  { %14 = sbr.rel (!%p12_p5) target bundleno = 2 (0x2), region = 70 }

</bundles_post_ra>
